<compile_context>
chip_gen: v5e
topology: v5e:2x2
jax: 0.10.0
libtpu: 0.0.40
codegen_flags: <defaults>
</compile_context>

<pallas_src>
import functools

import jax
import jax.numpy as jnp
from jax.experimental import pallas as pl
from jax.experimental.pallas import tpu as pltpu


def _lstm_kernel(x_ref, wih0_ref, wstep_ref, aux_ref, pred_ref,
                 *, seq_len, batch, hidden):
    """Entire T-step, 2-layer LSTM + MLP head in one invocation (no grid)."""
    T, B, H = seq_len, batch, hidden
    G = 4 * H

    # ---- Hoisted, time-independent layer-0 input projection for all steps ----
    # x: (T*B, I), wih0 (i/f/o cols pre-scaled by 0.5): (I, 4H), b0: aux row 0.
    b0 = aux_ref[0:1, :]                                              # (1, 4H)
    xproj = jnp.dot(x_ref[...], wih0_ref[...],
                    preferred_element_type=jnp.float32) + b0          # (T*B, 4H)
    xp = xproj.reshape(T, B, G)      # leading-axis index -> free per-step select

    wstep = wstep_ref[...]                                            # (2H, 8H)
    b1b = jnp.broadcast_to(aux_ref[1:2, :], (B, G))                   # hoisted

    # Lane mask selecting the g-gate block (PyTorch gate order: i, f, g, o).
    lane = jax.lax.broadcasted_iota(jnp.int32, (B, G), 1)
    is_g = (lane >= 2 * H) & (lane < 3 * H)

    def ew_cell(gates, c_prev):
        # Single tanh pass over the full gate tile. i/f/o pre-activations were
        # pre-scaled by 0.5 in the weights/biases, so
        #   sigmoid(z) = 0.5 * (1 + tanh(z/2)) = 0.5 * (a + 1).
        a = jnp.tanh(gates)
        act = jnp.where(is_g, a, 0.5 * (a + 1.0))
        i_g = act[:, 0:H]
        f_g = act[:, H:2 * H]
        g_g = act[:, 2 * H:3 * H]
        o_g = act[:, 3 * H:4 * H]
        c_new = f_g * c_prev + i_g * g_g
        h_new = o_g * jnp.tanh(c_new)
        return h_new, c_new

    zeros = jnp.zeros((B, H), jnp.float32)

    # Wavefront schedule: layer 0 is one step ahead of layer 1, so both layers'
    # recurrent matmuls fuse into ONE (B,2H)x(2H,8H) MXU dispatch per step.
    # Prologue (t=0, layer 0): initial state is zero -> gates are just xp[0].
    h0, c0 = ew_cell(xp[0], zeros)
    h1, c1 = zeros, zeros
    zs = []
    # TODO(synk): for large T switch this static unroll to lax.fori_loop to
    # bound compile time / vreg pressure (T=8 here, full unroll is optimal).
    for t in range(T):
        lhs = jnp.concatenate([h0, h1], axis=1)                       # (B, 2H)
        m = jnp.dot(lhs, wstep, preferred_element_type=jnp.float32)   # (B, 8H)
        r0 = m[:, 0:G]       # h0_t @ whh0            -> layer-0 recurrent, t+1
        r1 = m[:, G:2 * G]   # h0_t@wih1 + h1_{t-1}@whh1 -> layer-1 pre-gates, t
        h1, c1 = ew_cell(r1 + b1b, c1)                                # layer 1, t
        zs.append(h1)
        if t + 1 < T:
            h0, c0 = ew_cell(xp[t + 1] + r0, c0)                      # layer 0, t+1

    # ---- Batched MLP head over all T*B rows (hoisted out of the loop) ----
    z = jnp.concatenate(zs, axis=0)                                   # (T*B, H)
    w1 = aux_ref[8:8 + H, 0:H]                                        # (H, H)
    bl1 = aux_ref[8 + H:9 + H, 0:H]                                   # (1, H)
    w2r = aux_ref[9 + H:10 + H, 0:H]                                  # (1, H)
    bl2 = aux_ref[10 + H:11 + H, 0:1]                                 # (1, 1)
    hid = jnp.tanh(jnp.dot(z, w1, preferred_element_type=jnp.float32) + bl1)
    # N=1 projection as VPU multiply + lane reduction (skip a 1-wide MXU push).
    logit = jnp.sum(hid * w2r, axis=-1, keepdims=True) + bl2          # (T*B, 1)
    pred_ref[...] = jax.nn.sigmoid(logit)


def _pack_params(params):
    """Host-side one-time prep:
      * fold the sigmoid-via-tanh 0.5 pre-scale into the i/f/o gate columns,
      * stack both layers' recurrent weights into one (2H, 8H) block,
      * pack all remaining small tensors into a single aux array."""
    H = params["whh0"].shape[0]
    G = 4 * H
    # PyTorch gate order i, f, g, o: scale i/f/o pre-activations by 0.5 so the
    # kernel can compute sigmoid(z) = 0.5*(1 + tanh(z/2)) with one tanh pass.
    scale = jnp.concatenate([jnp.full((H,), 0.5, jnp.float32),
                             jnp.full((H,), 0.5, jnp.float32),
                             jnp.ones((H,), jnp.float32),
                             jnp.full((H,), 0.5, jnp.float32)])
    wih0 = params["wih0"] * scale
    whh0 = params["whh0"] * scale
    wih1 = params["wih1"] * scale
    whh1 = params["whh1"] * scale
    b0 = params["b0"] * scale
    b1 = params["b1"] * scale

    # Fused per-step recurrent weights: [h0 | h1] @ [[whh0, wih1], [0, whh1]].
    wstep = jnp.concatenate(
        [jnp.concatenate([whh0, wih1], axis=1),
         jnp.concatenate([jnp.zeros((H, G), jnp.float32), whh1], axis=1)],
        axis=0)                                                       # (2H, 8H)

    # Aux pack (lane width 4H): b0, b1, w1 (8-sublane aligned), bl1, w2^T, bl2.
    aux = jnp.zeros((11 + H, G), jnp.float32)
    aux = aux.at[0, :].set(b0[0])
    aux = aux.at[1, :].set(b1[0])
    aux = aux.at[8:8 + H, 0:H].set(params["w1"])
    aux = aux.at[8 + H, 0:H].set(params["bl1"][0])
    aux = aux.at[9 + H, 0:H].set(params["w2"][:, 0])
    aux = aux.at[10 + H, 0].set(params["bl2"][0, 0])
    return wih0, wstep, aux


def lstm_model_forward(x, params):
    """x: (T, B, input_size) f32.  Returns pred: (T, B, 1) f32 (PyTorch layout)."""
    T, B, input_size = x.shape
    H = params["whh0"].shape[0]

    x2d = x.reshape(T * B, input_size)                   # free metadata reshape
    wih0, wstep, aux = _pack_params(params)

    kernel = functools.partial(_lstm_kernel, seq_len=T, batch=B, hidden=H)
    args = (x2d, wih0, wstep, aux)
    in_specs = [pl.BlockSpec(memory_space=pltpu.MemorySpace.VMEM) for _ in args]

    pred2d = pl.pallas_call(
        kernel,
        out_shape=jax.ShapeDtypeStruct((T * B, 1), jnp.float32),
        in_specs=in_specs,
        out_specs=pl.BlockSpec(memory_space=pltpu.MemorySpace.VMEM),
    )(*args)
    return pred2d.reshape(T, B, 1)


def init_params(key, input_size, latent_size):
    """Deterministic synthetic parameters. Weights stored pre-transposed
    (in_dim, out_dim); LSTM biases stored as b_ih + b_hh combined, shape (1, 4H)."""
    H = latent_size
    ks = jax.random.split(key, 10)
    scale = 0.1
    return {
        "wih0": scale * jax.random.normal(ks[0], (input_size, 4 * H), jnp.float32),
        "whh0": scale * jax.random.normal(ks[1], (H, 4 * H), jnp.float32),
        "b0":   scale * jax.random.normal(ks[2], (1, 4 * H), jnp.float32),
        "wih1": scale * jax.random.normal(ks[3], (H, 4 * H), jnp.float32),
        "whh1": scale * jax.random.normal(ks[4], (H, 4 * H), jnp.float32),
        "b1":   scale * jax.random.normal(ks[5], (1, 4 * H), jnp.float32),
        "w1":   scale * jax.random.normal(ks[6], (H, H), jnp.float32),
        "bl1":  scale * jax.random.normal(ks[7], (1, H), jnp.float32),
        "w2":   scale * jax.random.normal(ks[8], (H, 1), jnp.float32),
        "bl2":  scale * jax.random.normal(ks[9], (1, 1), jnp.float32),
    }


def reference_forward(x, p):
    """Pure-JAX reference matching PyTorch nn.LSTM (zero initial state) + head."""
    T, B, _ = x.shape
    H = p["whh0"].shape[0]

    def cell(inp, h, c, wih, whh, b):
        g = inp @ wih + h @ whh + b
        i = jax.nn.sigmoid(g[:, :H])
        f = jax.nn.sigmoid(g[:, H:2 * H])
        gg = jnp.tanh(g[:, 2 * H:3 * H])
        o = jax.nn.sigmoid(g[:, 3 * H:4 * H])
        c2 = f * c + i * gg
        return o * jnp.tanh(c2), c2

    def step(carry, xt):
        h0, c0, h1, c1 = carry
        h0n, c0n = cell(xt, h0, c0, p["wih0"], p["whh0"], p["b0"])
        h1n, c1n = cell(h0n, h1, c1, p["wih1"], p["whh1"], p["b1"])
        return (h0n, c0n, h1n, c1n), h1n

    init = tuple(jnp.zeros((B, H), jnp.float32) for _ in range(4))
    _, z = jax.lax.scan(step, init, x)
    hid = jnp.tanh(z @ p["w1"] + p["bl1"])
    return jax.nn.sigmoid(hid @ p["w2"] + p["bl2"])


if __name__ == "__main__":
    # Small shapes consistent with the module: seq=8, batch=4,
    # input_size=16, latent_size=32, num_layers=2.
    T, B, INPUT_SIZE, LATENT = 8, 4, 16, 32

    key = jax.random.PRNGKey(0)
    k_x, k_p = jax.random.split(key)
    x = jax.random.normal(k_x, (T, B, INPUT_SIZE), jnp.float32)
    params = init_params(k_p, INPUT_SIZE, LATENT)

    pred = jax.block_until_ready(lstm_model_forward(x, params))
    ref = jax.block_until_ready(reference_forward(x, params))

    assert pred.shape == (T, B, 1), pred.shape
    # Slightly relaxed tolerance: sigmoid is computed as 0.5*(1+tanh(z/2)) in
    # the kernel (mathematically exact; different EUP approximation path).
    assert jnp.allclose(pred, ref, atol=1e-4, rtol=1e-4), (
        f"max abs err = {jnp.max(jnp.abs(pred - ref))}")

    print("KERNEL_OK")
</pallas_src>

<mosaic_0001>
module attributes {stable_mosaic.version = 11 : i64} {
  func.func @_lstm_kernel(%arg0: memref<32x16xf32, #tpu.memory_space<vmem>>, %arg1: memref<16x128xf32, #tpu.memory_space<vmem>>, %arg2: memref<64x256xf32, #tpu.memory_space<vmem>>, %arg3: memref<43x128xf32, #tpu.memory_space<vmem>>, %arg4: memref<32x1xf32, #tpu.memory_space<vmem>>) attributes {dimension_semantics = [], scalar_prefetch = 0 : i64, scratch_operands = 0 : i64, tpu.core_type = #tpu.core_type<tc>} {
    %c0 = arith.constant 0 : index
    %c0_0 = arith.constant 0 : index
    %0 = vector.load %arg3[%c0, %c0_0] : memref<43x128xf32, #tpu.memory_space<vmem>>, vector<1x128xf32>
    %c0_1 = arith.constant 0 : index
    %c0_2 = arith.constant 0 : index
    %1 = vector.load %arg0[%c0_1, %c0_2] : memref<32x16xf32, #tpu.memory_space<vmem>>, vector<32x16xf32>
    %c0_3 = arith.constant 0 : index
    %c0_4 = arith.constant 0 : index
    %2 = vector.load %arg1[%c0_3, %c0_4] : memref<16x128xf32, #tpu.memory_space<vmem>>, vector<16x128xf32>
    %cst = arith.constant dense<0.000000e+00> : vector<32x128xf32>
    %3 = tpu.matmul %1, %2, %cst {dimension_numbers = #tpu.dot_dimension_numbers<[1], [0], [0], [1], [0, 0, 1, 1], [], []>} : vector<32x16xf32>, vector<16x128xf32>, vector<32x128xf32> -> vector<32x128xf32>
    %4 = vector.broadcast %0 : vector<1x128xf32> to vector<32x128xf32>
    %5 = arith.addf %3, %4 : vector<32x128xf32>
    %6 = vector.shape_cast %5 : vector<32x128xf32> to vector<8x4x128xf32>
    %c0_5 = arith.constant 0 : index
    %c0_6 = arith.constant 0 : index
    %7 = vector.load %arg2[%c0_5, %c0_6] : memref<64x256xf32, #tpu.memory_space<vmem>>, vector<64x256xf32>
    %c1 = arith.constant 1 : index
    %c0_7 = arith.constant 0 : index
    %8 = vector.load %arg3[%c1, %c0_7] : memref<43x128xf32, #tpu.memory_space<vmem>>, vector<1x128xf32>
    %9 = vector.shape_cast %8 : vector<1x128xf32> to vector<1x128xf32>
    %10 = vector.broadcast %9 : vector<1x128xf32> to vector<4x128xf32>
    %11 = tpu.iota {dimensions = array<i32: 1>} : vector<4x128xi32>
    %c64_i32 = arith.constant 64 : i32
    %12 = vector.broadcast %c64_i32 : i32 to vector<4x128xi32>
    %13 = arith.cmpi sge, %11, %12 : vector<4x128xi32>
    %c96_i32 = arith.constant 96 : i32
    %14 = vector.broadcast %c96_i32 : i32 to vector<4x128xi32>
    %15 = arith.cmpi slt, %11, %14 : vector<4x128xi32>
    %16 = arith.andi %13, %15 : vector<4x128xi1>
    %cst_8 = arith.constant 0.000000e+00 : f32
    %17 = vector.broadcast %cst_8 : f32 to vector<4x32xf32>
    %18 = vector.extract_strided_slice %6 {offsets = [0, 0, 0], sizes = [1, 4, 128], strides = [1, 1, 1]} : vector<8x4x128xf32> to vector<1x4x128xf32>
    %19 = vector.shape_cast %18 : vector<1x4x128xf32> to vector<4x128xf32>
    %20 = math.tanh %19 : vector<4x128xf32>
    %cst_9 = arith.constant 1.000000e+00 : f32
    %21 = vector.broadcast %cst_9 : f32 to vector<4x128xf32>
    %22 = arith.addf %20, %21 : vector<4x128xf32>
    %cst_10 = arith.constant 5.000000e-01 : f32
    %23 = vector.broadcast %cst_10 : f32 to vector<4x128xf32>
    %24 = arith.mulf %23, %22 : vector<4x128xf32>
    %25 = arith.select %16, %20, %24 : vector<4x128xi1>, vector<4x128xf32>
    %26 = vector.extract_strided_slice %25 {offsets = [0, 0], sizes = [4, 32], strides = [1, 1]} : vector<4x128xf32> to vector<4x32xf32>
    %27 = vector.extract_strided_slice %25 {offsets = [0, 32], sizes = [4, 32], strides = [1, 1]} : vector<4x128xf32> to vector<4x32xf32>
    %28 = vector.extract_strided_slice %25 {offsets = [0, 64], sizes = [4, 32], strides = [1, 1]} : vector<4x128xf32> to vector<4x32xf32>
    %29 = vector.extract_strided_slice %25 {offsets = [0, 96], sizes = [4, 32], strides = [1, 1]} : vector<4x128xf32> to vector<4x32xf32>
    %30 = arith.mulf %27, %17 : vector<4x32xf32>
    %31 = arith.mulf %26, %28 : vector<4x32xf32>
    %32 = arith.addf %30, %31 : vector<4x32xf32>
    %33 = math.tanh %32 : vector<4x32xf32>
    %34 = arith.mulf %29, %33 : vector<4x32xf32>
    %35 = tpu.concatenate %34, %17 in 1 : vector<4x32xf32>, vector<4x32xf32> -> vector<4x64xf32>
    %cst_11 = arith.constant dense<0.000000e+00> : vector<4x256xf32>
    %36 = tpu.matmul %35, %7, %cst_11 {dimension_numbers = #tpu.dot_dimension_numbers<[1], [0], [0], [1], [0, 0, 1, 1], [], []>} : vector<4x64xf32>, vector<64x256xf32>, vector<4x256xf32> -> vector<4x256xf32>
    %37 = vector.extract_strided_slice %36 {offsets = [0, 0], sizes = [4, 128], strides = [1, 1]} : vector<4x256xf32> to vector<4x128xf32>
    %38 = vector.extract_strided_slice %36 {offsets = [0, 128], sizes = [4, 128], strides = [1, 1]} : vector<4x256xf32> to vector<4x128xf32>
    %39 = arith.addf %38, %10 : vector<4x128xf32>
    %40 = math.tanh %39 : vector<4x128xf32>
    %cst_12 = arith.constant 1.000000e+00 : f32
    %41 = vector.broadcast %cst_12 : f32 to vector<4x128xf32>
    %42 = arith.addf %40, %41 : vector<4x128xf32>
    %cst_13 = arith.constant 5.000000e-01 : f32
    %43 = vector.broadcast %cst_13 : f32 to vector<4x128xf32>
    %44 = arith.mulf %43, %42 : vector<4x128xf32>
    %45 = arith.select %16, %40, %44 : vector<4x128xi1>, vector<4x128xf32>
    %46 = vector.extract_strided_slice %45 {offsets = [0, 0], sizes = [4, 32], strides = [1, 1]} : vector<4x128xf32> to vector<4x32xf32>
    %47 = vector.extract_strided_slice %45 {offsets = [0, 32], sizes = [4, 32], strides = [1, 1]} : vector<4x128xf32> to vector<4x32xf32>
    %48 = vector.extract_strided_slice %45 {offsets = [0, 64], sizes = [4, 32], strides = [1, 1]} : vector<4x128xf32> to vector<4x32xf32>
    %49 = vector.extract_strided_slice %45 {offsets = [0, 96], sizes = [4, 32], strides = [1, 1]} : vector<4x128xf32> to vector<4x32xf32>
    %50 = arith.mulf %47, %17 : vector<4x32xf32>
    %51 = arith.mulf %46, %48 : vector<4x32xf32>
    %52 = arith.addf %50, %51 : vector<4x32xf32>
    %53 = math.tanh %52 : vector<4x32xf32>
    %54 = arith.mulf %49, %53 : vector<4x32xf32>
    %55 = vector.extract_strided_slice %6 {offsets = [1, 0, 0], sizes = [1, 4, 128], strides = [1, 1, 1]} : vector<8x4x128xf32> to vector<1x4x128xf32>
    %56 = vector.shape_cast %55 : vector<1x4x128xf32> to vector<4x128xf32>
    %57 = arith.addf %56, %37 : vector<4x128xf32>
    %58 = math.tanh %57 : vector<4x128xf32>
    %cst_14 = arith.constant 1.000000e+00 : f32
    %59 = vector.broadcast %cst_14 : f32 to vector<4x128xf32>
    %60 = arith.addf %58, %59 : vector<4x128xf32>
    %cst_15 = arith.constant 5.000000e-01 : f32
    %61 = vector.broadcast %cst_15 : f32 to vector<4x128xf32>
    %62 = arith.mulf %61, %60 : vector<4x128xf32>
    %63 = arith.select %16, %58, %62 : vector<4x128xi1>, vector<4x128xf32>
    %64 = vector.extract_strided_slice %63 {offsets = [0, 0], sizes = [4, 32], strides = [1, 1]} : vector<4x128xf32> to vector<4x32xf32>
    %65 = vector.extract_strided_slice %63 {offsets = [0, 32], sizes = [4, 32], strides = [1, 1]} : vector<4x128xf32> to vector<4x32xf32>
    %66 = vector.extract_strided_slice %63 {offsets = [0, 64], sizes = [4, 32], strides = [1, 1]} : vector<4x128xf32> to vector<4x32xf32>
    %67 = vector.extract_strided_slice %63 {offsets = [0, 96], sizes = [4, 32], strides = [1, 1]} : vector<4x128xf32> to vector<4x32xf32>
    %68 = arith.mulf %65, %32 : vector<4x32xf32>
    %69 = arith.mulf %64, %66 : vector<4x32xf32>
    %70 = arith.addf %68, %69 : vector<4x32xf32>
    %71 = math.tanh %70 : vector<4x32xf32>
    %72 = arith.mulf %67, %71 : vector<4x32xf32>
    %73 = tpu.concatenate %72, %54 in 1 : vector<4x32xf32>, vector<4x32xf32> -> vector<4x64xf32>
    %cst_16 = arith.constant dense<0.000000e+00> : vector<4x256xf32>
    %74 = tpu.matmul %73, %7, %cst_16 {dimension_numbers = #tpu.dot_dimension_numbers<[1], [0], [0], [1], [0, 0, 1, 1], [], []>} : vector<4x64xf32>, vector<64x256xf32>, vector<4x256xf32> -> vector<4x256xf32>
    %75 = vector.extract_strided_slice %74 {offsets = [0, 0], sizes = [4, 128], strides = [1, 1]} : vector<4x256xf32> to vector<4x128xf32>
    %76 = vector.extract_strided_slice %74 {offsets = [0, 128], sizes = [4, 128], strides = [1, 1]} : vector<4x256xf32> to vector<4x128xf32>
    %77 = arith.addf %76, %10 : vector<4x128xf32>
    %78 = math.tanh %77 : vector<4x128xf32>
    %cst_17 = arith.constant 1.000000e+00 : f32
    %79 = vector.broadcast %cst_17 : f32 to vector<4x128xf32>
    %80 = arith.addf %78, %79 : vector<4x128xf32>
    %cst_18 = arith.constant 5.000000e-01 : f32
    %81 = vector.broadcast %cst_18 : f32 to vector<4x128xf32>
    %82 = arith.mulf %81, %80 : vector<4x128xf32>
    %83 = arith.select %16, %78, %82 : vector<4x128xi1>, vector<4x128xf32>
    %84 = vector.extract_strided_slice %83 {offsets = [0, 0], sizes = [4, 32], strides = [1, 1]} : vector<4x128xf32> to vector<4x32xf32>
    %85 = vector.extract_strided_slice %83 {offsets = [0, 32], sizes = [4, 32], strides = [1, 1]} : vector<4x128xf32> to vector<4x32xf32>
    %86 = vector.extract_strided_slice %83 {offsets = [0, 64], sizes = [4, 32], strides = [1, 1]} : vector<4x128xf32> to vector<4x32xf32>
    %87 = vector.extract_strided_slice %83 {offsets = [0, 96], sizes = [4, 32], strides = [1, 1]} : vector<4x128xf32> to vector<4x32xf32>
    %88 = arith.mulf %85, %52 : vector<4x32xf32>
    %89 = arith.mulf %84, %86 : vector<4x32xf32>
    %90 = arith.addf %88, %89 : vector<4x32xf32>
    %91 = math.tanh %90 : vector<4x32xf32>
    %92 = arith.mulf %87, %91 : vector<4x32xf32>
    %93 = vector.extract_strided_slice %6 {offsets = [2, 0, 0], sizes = [1, 4, 128], strides = [1, 1, 1]} : vector<8x4x128xf32> to vector<1x4x128xf32>
    %94 = vector.shape_cast %93 : vector<1x4x128xf32> to vector<4x128xf32>
    %95 = arith.addf %94, %75 : vector<4x128xf32>
    %96 = math.tanh %95 : vector<4x128xf32>
    %cst_19 = arith.constant 1.000000e+00 : f32
    %97 = vector.broadcast %cst_19 : f32 to vector<4x128xf32>
    %98 = arith.addf %96, %97 : vector<4x128xf32>
    %cst_20 = arith.constant 5.000000e-01 : f32
    %99 = vector.broadcast %cst_20 : f32 to vector<4x128xf32>
    %100 = arith.mulf %99, %98 : vector<4x128xf32>
    %101 = arith.select %16, %96, %100 : vector<4x128xi1>, vector<4x128xf32>
    %102 = vector.extract_strided_slice %101 {offsets = [0, 0], sizes = [4, 32], strides = [1, 1]} : vector<4x128xf32> to vector<4x32xf32>
    %103 = vector.extract_strided_slice %101 {offsets = [0, 32], sizes = [4, 32], strides = [1, 1]} : vector<4x128xf32> to vector<4x32xf32>
    %104 = vector.extract_strided_slice %101 {offsets = [0, 64], sizes = [4, 32], strides = [1, 1]} : vector<4x128xf32> to vector<4x32xf32>
    %105 = vector.extract_strided_slice %101 {offsets = [0, 96], sizes = [4, 32], strides = [1, 1]} : vector<4x128xf32> to vector<4x32xf32>
    %106 = arith.mulf %103, %70 : vector<4x32xf32>
    %107 = arith.mulf %102, %104 : vector<4x32xf32>
    %108 = arith.addf %106, %107 : vector<4x32xf32>
    %109 = math.tanh %108 : vector<4x32xf32>
    %110 = arith.mulf %105, %109 : vector<4x32xf32>
    %111 = tpu.concatenate %110, %92 in 1 : vector<4x32xf32>, vector<4x32xf32> -> vector<4x64xf32>
    %cst_21 = arith.constant dense<0.000000e+00> : vector<4x256xf32>
    %112 = tpu.matmul %111, %7, %cst_21 {dimension_numbers = #tpu.dot_dimension_numbers<[1], [0], [0], [1], [0, 0, 1, 1], [], []>} : vector<4x64xf32>, vector<64x256xf32>, vector<4x256xf32> -> vector<4x256xf32>
    %113 = vector.extract_strided_slice %112 {offsets = [0, 0], sizes = [4, 128], strides = [1, 1]} : vector<4x256xf32> to vector<4x128xf32>
    %114 = vector.extract_strided_slice %112 {offsets = [0, 128], sizes = [4, 128], strides = [1, 1]} : vector<4x256xf32> to vector<4x128xf32>
    %115 = arith.addf %114, %10 : vector<4x128xf32>
    %116 = math.tanh %115 : vector<4x128xf32>
    %cst_22 = arith.constant 1.000000e+00 : f32
    %117 = vector.broadcast %cst_22 : f32 to vector<4x128xf32>
    %118 = arith.addf %116, %117 : vector<4x128xf32>
    %cst_23 = arith.constant 5.000000e-01 : f32
    %119 = vector.broadcast %cst_23 : f32 to vector<4x128xf32>
    %120 = arith.mulf %119, %118 : vector<4x128xf32>
    %121 = arith.select %16, %116, %120 : vector<4x128xi1>, vector<4x128xf32>
    %122 = vector.extract_strided_slice %121 {offsets = [0, 0], sizes = [4, 32], strides = [1, 1]} : vector<4x128xf32> to vector<4x32xf32>
    %123 = vector.extract_strided_slice %121 {offsets = [0, 32], sizes = [4, 32], strides = [1, 1]} : vector<4x128xf32> to vector<4x32xf32>
    %124 = vector.extract_strided_slice %121 {offsets = [0, 64], sizes = [4, 32], strides = [1, 1]} : vector<4x128xf32> to vector<4x32xf32>
    %125 = vector.extract_strided_slice %121 {offsets = [0, 96], sizes = [4, 32], strides = [1, 1]} : vector<4x128xf32> to vector<4x32xf32>
    %126 = arith.mulf %123, %90 : vector<4x32xf32>
    %127 = arith.mulf %122, %124 : vector<4x32xf32>
    %128 = arith.addf %126, %127 : vector<4x32xf32>
    %129 = math.tanh %128 : vector<4x32xf32>
    %130 = arith.mulf %125, %129 : vector<4x32xf32>
    %131 = vector.extract_strided_slice %6 {offsets = [3, 0, 0], sizes = [1, 4, 128], strides = [1, 1, 1]} : vector<8x4x128xf32> to vector<1x4x128xf32>
    %132 = vector.shape_cast %131 : vector<1x4x128xf32> to vector<4x128xf32>
    %133 = arith.addf %132, %113 : vector<4x128xf32>
    %134 = math.tanh %133 : vector<4x128xf32>
    %cst_24 = arith.constant 1.000000e+00 : f32
    %135 = vector.broadcast %cst_24 : f32 to vector<4x128xf32>
    %136 = arith.addf %134, %135 : vector<4x128xf32>
    %cst_25 = arith.constant 5.000000e-01 : f32
    %137 = vector.broadcast %cst_25 : f32 to vector<4x128xf32>
    %138 = arith.mulf %137, %136 : vector<4x128xf32>
    %139 = arith.select %16, %134, %138 : vector<4x128xi1>, vector<4x128xf32>
    %140 = vector.extract_strided_slice %139 {offsets = [0, 0], sizes = [4, 32], strides = [1, 1]} : vector<4x128xf32> to vector<4x32xf32>
    %141 = vector.extract_strided_slice %139 {offsets = [0, 32], sizes = [4, 32], strides = [1, 1]} : vector<4x128xf32> to vector<4x32xf32>
    %142 = vector.extract_strided_slice %139 {offsets = [0, 64], sizes = [4, 32], strides = [1, 1]} : vector<4x128xf32> to vector<4x32xf32>
    %143 = vector.extract_strided_slice %139 {offsets = [0, 96], sizes = [4, 32], strides = [1, 1]} : vector<4x128xf32> to vector<4x32xf32>
    %144 = arith.mulf %141, %108 : vector<4x32xf32>
    %145 = arith.mulf %140, %142 : vector<4x32xf32>
    %146 = arith.addf %144, %145 : vector<4x32xf32>
    %147 = math.tanh %146 : vector<4x32xf32>
    %148 = arith.mulf %143, %147 : vector<4x32xf32>
    %149 = tpu.concatenate %148, %130 in 1 : vector<4x32xf32>, vector<4x32xf32> -> vector<4x64xf32>
    %cst_26 = arith.constant dense<0.000000e+00> : vector<4x256xf32>
    %150 = tpu.matmul %149, %7, %cst_26 {dimension_numbers = #tpu.dot_dimension_numbers<[1], [0], [0], [1], [0, 0, 1, 1], [], []>} : vector<4x64xf32>, vector<64x256xf32>, vector<4x256xf32> -> vector<4x256xf32>
    %151 = vector.extract_strided_slice %150 {offsets = [0, 0], sizes = [4, 128], strides = [1, 1]} : vector<4x256xf32> to vector<4x128xf32>
    %152 = vector.extract_strided_slice %150 {offsets = [0, 128], sizes = [4, 128], strides = [1, 1]} : vector<4x256xf32> to vector<4x128xf32>
    %153 = arith.addf %152, %10 : vector<4x128xf32>
    %154 = math.tanh %153 : vector<4x128xf32>
    %cst_27 = arith.constant 1.000000e+00 : f32
    %155 = vector.broadcast %cst_27 : f32 to vector<4x128xf32>
    %156 = arith.addf %154, %155 : vector<4x128xf32>
    %cst_28 = arith.constant 5.000000e-01 : f32
    %157 = vector.broadcast %cst_28 : f32 to vector<4x128xf32>
    %158 = arith.mulf %157, %156 : vector<4x128xf32>
    %159 = arith.select %16, %154, %158 : vector<4x128xi1>, vector<4x128xf32>
    %160 = vector.extract_strided_slice %159 {offsets = [0, 0], sizes = [4, 32], strides = [1, 1]} : vector<4x128xf32> to vector<4x32xf32>
    %161 = vector.extract_strided_slice %159 {offsets = [0, 32], sizes = [4, 32], strides = [1, 1]} : vector<4x128xf32> to vector<4x32xf32>
    %162 = vector.extract_strided_slice %159 {offsets = [0, 64], sizes = [4, 32], strides = [1, 1]} : vector<4x128xf32> to vector<4x32xf32>
    %163 = vector.extract_strided_slice %159 {offsets = [0, 96], sizes = [4, 32], strides = [1, 1]} : vector<4x128xf32> to vector<4x32xf32>
    %164 = arith.mulf %161, %128 : vector<4x32xf32>
    %165 = arith.mulf %160, %162 : vector<4x32xf32>
    %166 = arith.addf %164, %165 : vector<4x32xf32>
    %167 = math.tanh %166 : vector<4x32xf32>
    %168 = arith.mulf %163, %167 : vector<4x32xf32>
    %169 = vector.extract_strided_slice %6 {offsets = [4, 0, 0], sizes = [1, 4, 128], strides = [1, 1, 1]} : vector<8x4x128xf32> to vector<1x4x128xf32>
    %170 = vector.shape_cast %169 : vector<1x4x128xf32> to vector<4x128xf32>
    %171 = arith.addf %170, %151 : vector<4x128xf32>
    %172 = math.tanh %171 : vector<4x128xf32>
    %cst_29 = arith.constant 1.000000e+00 : f32
    %173 = vector.broadcast %cst_29 : f32 to vector<4x128xf32>
    %174 = arith.addf %172, %173 : vector<4x128xf32>
    %cst_30 = arith.constant 5.000000e-01 : f32
    %175 = vector.broadcast %cst_30 : f32 to vector<4x128xf32>
    %176 = arith.mulf %175, %174 : vector<4x128xf32>
    %177 = arith.select %16, %172, %176 : vector<4x128xi1>, vector<4x128xf32>
    %178 = vector.extract_strided_slice %177 {offsets = [0, 0], sizes = [4, 32], strides = [1, 1]} : vector<4x128xf32> to vector<4x32xf32>
    %179 = vector.extract_strided_slice %177 {offsets = [0, 32], sizes = [4, 32], strides = [1, 1]} : vector<4x128xf32> to vector<4x32xf32>
    %180 = vector.extract_strided_slice %177 {offsets = [0, 64], sizes = [4, 32], strides = [1, 1]} : vector<4x128xf32> to vector<4x32xf32>
    %181 = vector.extract_strided_slice %177 {offsets = [0, 96], sizes = [4, 32], strides = [1, 1]} : vector<4x128xf32> to vector<4x32xf32>
    %182 = arith.mulf %179, %146 : vector<4x32xf32>
    %183 = arith.mulf %178, %180 : vector<4x32xf32>
    %184 = arith.addf %182, %183 : vector<4x32xf32>
    %185 = math.tanh %184 : vector<4x32xf32>
    %186 = arith.mulf %181, %185 : vector<4x32xf32>
    %187 = tpu.concatenate %186, %168 in 1 : vector<4x32xf32>, vector<4x32xf32> -> vector<4x64xf32>
    %cst_31 = arith.constant dense<0.000000e+00> : vector<4x256xf32>
    %188 = tpu.matmul %187, %7, %cst_31 {dimension_numbers = #tpu.dot_dimension_numbers<[1], [0], [0], [1], [0, 0, 1, 1], [], []>} : vector<4x64xf32>, vector<64x256xf32>, vector<4x256xf32> -> vector<4x256xf32>
    %189 = vector.extract_strided_slice %188 {offsets = [0, 0], sizes = [4, 128], strides = [1, 1]} : vector<4x256xf32> to vector<4x128xf32>
    %190 = vector.extract_strided_slice %188 {offsets = [0, 128], sizes = [4, 128], strides = [1, 1]} : vector<4x256xf32> to vector<4x128xf32>
    %191 = arith.addf %190, %10 : vector<4x128xf32>
    %192 = math.tanh %191 : vector<4x128xf32>
    %cst_32 = arith.constant 1.000000e+00 : f32
    %193 = vector.broadcast %cst_32 : f32 to vector<4x128xf32>
    %194 = arith.addf %192, %193 : vector<4x128xf32>
    %cst_33 = arith.constant 5.000000e-01 : f32
    %195 = vector.broadcast %cst_33 : f32 to vector<4x128xf32>
    %196 = arith.mulf %195, %194 : vector<4x128xf32>
    %197 = arith.select %16, %192, %196 : vector<4x128xi1>, vector<4x128xf32>
    %198 = vector.extract_strided_slice %197 {offsets = [0, 0], sizes = [4, 32], strides = [1, 1]} : vector<4x128xf32> to vector<4x32xf32>
    %199 = vector.extract_strided_slice %197 {offsets = [0, 32], sizes = [4, 32], strides = [1, 1]} : vector<4x128xf32> to vector<4x32xf32>
    %200 = vector.extract_strided_slice %197 {offsets = [0, 64], sizes = [4, 32], strides = [1, 1]} : vector<4x128xf32> to vector<4x32xf32>
    %201 = vector.extract_strided_slice %197 {offsets = [0, 96], sizes = [4, 32], strides = [1, 1]} : vector<4x128xf32> to vector<4x32xf32>
    %202 = arith.mulf %199, %166 : vector<4x32xf32>
    %203 = arith.mulf %198, %200 : vector<4x32xf32>
    %204 = arith.addf %202, %203 : vector<4x32xf32>
    %205 = math.tanh %204 : vector<4x32xf32>
    %206 = arith.mulf %201, %205 : vector<4x32xf32>
    %207 = vector.extract_strided_slice %6 {offsets = [5, 0, 0], sizes = [1, 4, 128], strides = [1, 1, 1]} : vector<8x4x128xf32> to vector<1x4x128xf32>
    %208 = vector.shape_cast %207 : vector<1x4x128xf32> to vector<4x128xf32>
    %209 = arith.addf %208, %189 : vector<4x128xf32>
    %210 = math.tanh %209 : vector<4x128xf32>
    %cst_34 = arith.constant 1.000000e+00 : f32
    %211 = vector.broadcast %cst_34 : f32 to vector<4x128xf32>
    %212 = arith.addf %210, %211 : vector<4x128xf32>
    %cst_35 = arith.constant 5.000000e-01 : f32
    %213 = vector.broadcast %cst_35 : f32 to vector<4x128xf32>
    %214 = arith.mulf %213, %212 : vector<4x128xf32>
    %215 = arith.select %16, %210, %214 : vector<4x128xi1>, vector<4x128xf32>
    %216 = vector.extract_strided_slice %215 {offsets = [0, 0], sizes = [4, 32], strides = [1, 1]} : vector<4x128xf32> to vector<4x32xf32>
    %217 = vector.extract_strided_slice %215 {offsets = [0, 32], sizes = [4, 32], strides = [1, 1]} : vector<4x128xf32> to vector<4x32xf32>
    %218 = vector.extract_strided_slice %215 {offsets = [0, 64], sizes = [4, 32], strides = [1, 1]} : vector<4x128xf32> to vector<4x32xf32>
    %219 = vector.extract_strided_slice %215 {offsets = [0, 96], sizes = [4, 32], strides = [1, 1]} : vector<4x128xf32> to vector<4x32xf32>
    %220 = arith.mulf %217, %184 : vector<4x32xf32>
    %221 = arith.mulf %216, %218 : vector<4x32xf32>
    %222 = arith.addf %220, %221 : vector<4x32xf32>
    %223 = math.tanh %222 : vector<4x32xf32>
    %224 = arith.mulf %219, %223 : vector<4x32xf32>
    %225 = tpu.concatenate %224, %206 in 1 : vector<4x32xf32>, vector<4x32xf32> -> vector<4x64xf32>
    %cst_36 = arith.constant dense<0.000000e+00> : vector<4x256xf32>
    %226 = tpu.matmul %225, %7, %cst_36 {dimension_numbers = #tpu.dot_dimension_numbers<[1], [0], [0], [1], [0, 0, 1, 1], [], []>} : vector<4x64xf32>, vector<64x256xf32>, vector<4x256xf32> -> vector<4x256xf32>
    %227 = vector.extract_strided_slice %226 {offsets = [0, 0], sizes = [4, 128], strides = [1, 1]} : vector<4x256xf32> to vector<4x128xf32>
    %228 = vector.extract_strided_slice %226 {offsets = [0, 128], sizes = [4, 128], strides = [1, 1]} : vector<4x256xf32> to vector<4x128xf32>
    %229 = arith.addf %228, %10 : vector<4x128xf32>
    %230 = math.tanh %229 : vector<4x128xf32>
    %cst_37 = arith.constant 1.000000e+00 : f32
    %231 = vector.broadcast %cst_37 : f32 to vector<4x128xf32>
    %232 = arith.addf %230, %231 : vector<4x128xf32>
    %cst_38 = arith.constant 5.000000e-01 : f32
    %233 = vector.broadcast %cst_38 : f32 to vector<4x128xf32>
    %234 = arith.mulf %233, %232 : vector<4x128xf32>
    %235 = arith.select %16, %230, %234 : vector<4x128xi1>, vector<4x128xf32>
    %236 = vector.extract_strided_slice %235 {offsets = [0, 0], sizes = [4, 32], strides = [1, 1]} : vector<4x128xf32> to vector<4x32xf32>
    %237 = vector.extract_strided_slice %235 {offsets = [0, 32], sizes = [4, 32], strides = [1, 1]} : vector<4x128xf32> to vector<4x32xf32>
    %238 = vector.extract_strided_slice %235 {offsets = [0, 64], sizes = [4, 32], strides = [1, 1]} : vector<4x128xf32> to vector<4x32xf32>
    %239 = vector.extract_strided_slice %235 {offsets = [0, 96], sizes = [4, 32], strides = [1, 1]} : vector<4x128xf32> to vector<4x32xf32>
    %240 = arith.mulf %237, %204 : vector<4x32xf32>
    %241 = arith.mulf %236, %238 : vector<4x32xf32>
    %242 = arith.addf %240, %241 : vector<4x32xf32>
    %243 = math.tanh %242 : vector<4x32xf32>
    %244 = arith.mulf %239, %243 : vector<4x32xf32>
    %245 = vector.extract_strided_slice %6 {offsets = [6, 0, 0], sizes = [1, 4, 128], strides = [1, 1, 1]} : vector<8x4x128xf32> to vector<1x4x128xf32>
    %246 = vector.shape_cast %245 : vector<1x4x128xf32> to vector<4x128xf32>
    %247 = arith.addf %246, %227 : vector<4x128xf32>
    %248 = math.tanh %247 : vector<4x128xf32>
    %cst_39 = arith.constant 1.000000e+00 : f32
    %249 = vector.broadcast %cst_39 : f32 to vector<4x128xf32>
    %250 = arith.addf %248, %249 : vector<4x128xf32>
    %cst_40 = arith.constant 5.000000e-01 : f32
    %251 = vector.broadcast %cst_40 : f32 to vector<4x128xf32>
    %252 = arith.mulf %251, %250 : vector<4x128xf32>
    %253 = arith.select %16, %248, %252 : vector<4x128xi1>, vector<4x128xf32>
    %254 = vector.extract_strided_slice %253 {offsets = [0, 0], sizes = [4, 32], strides = [1, 1]} : vector<4x128xf32> to vector<4x32xf32>
    %255 = vector.extract_strided_slice %253 {offsets = [0, 32], sizes = [4, 32], strides = [1, 1]} : vector<4x128xf32> to vector<4x32xf32>
    %256 = vector.extract_strided_slice %253 {offsets = [0, 64], sizes = [4, 32], strides = [1, 1]} : vector<4x128xf32> to vector<4x32xf32>
    %257 = vector.extract_strided_slice %253 {offsets = [0, 96], sizes = [4, 32], strides = [1, 1]} : vector<4x128xf32> to vector<4x32xf32>
    %258 = arith.mulf %255, %222 : vector<4x32xf32>
    %259 = arith.mulf %254, %256 : vector<4x32xf32>
    %260 = arith.addf %258, %259 : vector<4x32xf32>
    %261 = math.tanh %260 : vector<4x32xf32>
    %262 = arith.mulf %257, %261 : vector<4x32xf32>
    %263 = tpu.concatenate %262, %244 in 1 : vector<4x32xf32>, vector<4x32xf32> -> vector<4x64xf32>
    %cst_41 = arith.constant dense<0.000000e+00> : vector<4x256xf32>
    %264 = tpu.matmul %263, %7, %cst_41 {dimension_numbers = #tpu.dot_dimension_numbers<[1], [0], [0], [1], [0, 0, 1, 1], [], []>} : vector<4x64xf32>, vector<64x256xf32>, vector<4x256xf32> -> vector<4x256xf32>
    %265 = vector.extract_strided_slice %264 {offsets = [0, 0], sizes = [4, 128], strides = [1, 1]} : vector<4x256xf32> to vector<4x128xf32>
    %266 = vector.extract_strided_slice %264 {offsets = [0, 128], sizes = [4, 128], strides = [1, 1]} : vector<4x256xf32> to vector<4x128xf32>
    %267 = arith.addf %266, %10 : vector<4x128xf32>
    %268 = math.tanh %267 : vector<4x128xf32>
    %cst_42 = arith.constant 1.000000e+00 : f32
    %269 = vector.broadcast %cst_42 : f32 to vector<4x128xf32>
    %270 = arith.addf %268, %269 : vector<4x128xf32>
    %cst_43 = arith.constant 5.000000e-01 : f32
    %271 = vector.broadcast %cst_43 : f32 to vector<4x128xf32>
    %272 = arith.mulf %271, %270 : vector<4x128xf32>
    %273 = arith.select %16, %268, %272 : vector<4x128xi1>, vector<4x128xf32>
    %274 = vector.extract_strided_slice %273 {offsets = [0, 0], sizes = [4, 32], strides = [1, 1]} : vector<4x128xf32> to vector<4x32xf32>
    %275 = vector.extract_strided_slice %273 {offsets = [0, 32], sizes = [4, 32], strides = [1, 1]} : vector<4x128xf32> to vector<4x32xf32>
    %276 = vector.extract_strided_slice %273 {offsets = [0, 64], sizes = [4, 32], strides = [1, 1]} : vector<4x128xf32> to vector<4x32xf32>
    %277 = vector.extract_strided_slice %273 {offsets = [0, 96], sizes = [4, 32], strides = [1, 1]} : vector<4x128xf32> to vector<4x32xf32>
    %278 = arith.mulf %275, %242 : vector<4x32xf32>
    %279 = arith.mulf %274, %276 : vector<4x32xf32>
    %280 = arith.addf %278, %279 : vector<4x32xf32>
    %281 = math.tanh %280 : vector<4x32xf32>
    %282 = arith.mulf %277, %281 : vector<4x32xf32>
    %283 = vector.extract_strided_slice %6 {offsets = [7, 0, 0], sizes = [1, 4, 128], strides = [1, 1, 1]} : vector<8x4x128xf32> to vector<1x4x128xf32>
    %284 = vector.shape_cast %283 : vector<1x4x128xf32> to vector<4x128xf32>
    %285 = arith.addf %284, %265 : vector<4x128xf32>
    %286 = math.tanh %285 : vector<4x128xf32>
    %cst_44 = arith.constant 1.000000e+00 : f32
    %287 = vector.broadcast %cst_44 : f32 to vector<4x128xf32>
    %288 = arith.addf %286, %287 : vector<4x128xf32>
    %cst_45 = arith.constant 5.000000e-01 : f32
    %289 = vector.broadcast %cst_45 : f32 to vector<4x128xf32>
    %290 = arith.mulf %289, %288 : vector<4x128xf32>
    %291 = arith.select %16, %286, %290 : vector<4x128xi1>, vector<4x128xf32>
    %292 = vector.extract_strided_slice %291 {offsets = [0, 0], sizes = [4, 32], strides = [1, 1]} : vector<4x128xf32> to vector<4x32xf32>
    %293 = vector.extract_strided_slice %291 {offsets = [0, 32], sizes = [4, 32], strides = [1, 1]} : vector<4x128xf32> to vector<4x32xf32>
    %294 = vector.extract_strided_slice %291 {offsets = [0, 64], sizes = [4, 32], strides = [1, 1]} : vector<4x128xf32> to vector<4x32xf32>
    %295 = vector.extract_strided_slice %291 {offsets = [0, 96], sizes = [4, 32], strides = [1, 1]} : vector<4x128xf32> to vector<4x32xf32>
    %296 = arith.mulf %293, %260 : vector<4x32xf32>
    %297 = arith.mulf %292, %294 : vector<4x32xf32>
    %298 = arith.addf %296, %297 : vector<4x32xf32>
    %299 = math.tanh %298 : vector<4x32xf32>
    %300 = arith.mulf %295, %299 : vector<4x32xf32>
    %301 = tpu.concatenate %300, %282 in 1 : vector<4x32xf32>, vector<4x32xf32> -> vector<4x64xf32>
    %cst_46 = arith.constant dense<0.000000e+00> : vector<4x256xf32>
    %302 = tpu.matmul %301, %7, %cst_46 {dimension_numbers = #tpu.dot_dimension_numbers<[1], [0], [0], [1], [0, 0, 1, 1], [], []>} : vector<4x64xf32>, vector<64x256xf32>, vector<4x256xf32> -> vector<4x256xf32>
    %303 = vector.extract_strided_slice %302 {offsets = [0, 128], sizes = [4, 128], strides = [1, 1]} : vector<4x256xf32> to vector<4x128xf32>
    %304 = arith.addf %303, %10 : vector<4x128xf32>
    %305 = math.tanh %304 : vector<4x128xf32>
    %cst_47 = arith.constant 1.000000e+00 : f32
    %306 = vector.broadcast %cst_47 : f32 to vector<4x128xf32>
    %307 = arith.addf %305, %306 : vector<4x128xf32>
    %cst_48 = arith.constant 5.000000e-01 : f32
    %308 = vector.broadcast %cst_48 : f32 to vector<4x128xf32>
    %309 = arith.mulf %308, %307 : vector<4x128xf32>
    %310 = arith.select %16, %305, %309 : vector<4x128xi1>, vector<4x128xf32>
    %311 = vector.extract_strided_slice %310 {offsets = [0, 0], sizes = [4, 32], strides = [1, 1]} : vector<4x128xf32> to vector<4x32xf32>
    %312 = vector.extract_strided_slice %310 {offsets = [0, 32], sizes = [4, 32], strides = [1, 1]} : vector<4x128xf32> to vector<4x32xf32>
    %313 = vector.extract_strided_slice %310 {offsets = [0, 64], sizes = [4, 32], strides = [1, 1]} : vector<4x128xf32> to vector<4x32xf32>
    %314 = vector.extract_strided_slice %310 {offsets = [0, 96], sizes = [4, 32], strides = [1, 1]} : vector<4x128xf32> to vector<4x32xf32>
    %315 = arith.mulf %312, %280 : vector<4x32xf32>
    %316 = arith.mulf %311, %313 : vector<4x32xf32>
    %317 = arith.addf %315, %316 : vector<4x32xf32>
    %318 = math.tanh %317 : vector<4x32xf32>
    %319 = arith.mulf %314, %318 : vector<4x32xf32>
    %320 = tpu.concatenate %54, %92, %130, %168, %206, %244, %282, %319 in 0 : vector<4x32xf32>, vector<4x32xf32>, vector<4x32xf32>, vector<4x32xf32>, vector<4x32xf32>, vector<4x32xf32>, vector<4x32xf32>, vector<4x32xf32> -> vector<32x32xf32>
    %c8 = arith.constant 8 : index
    %c0_49 = arith.constant 0 : index
    %321 = vector.load %arg3[%c8, %c0_49] : memref<43x128xf32, #tpu.memory_space<vmem>>, vector<32x32xf32>
    %c40 = arith.constant 40 : index
    %c0_50 = arith.constant 0 : index
    %322 = vector.load %arg3[%c40, %c0_50] : memref<43x128xf32, #tpu.memory_space<vmem>>, vector<1x32xf32>
    %c41 = arith.constant 41 : index
    %c0_51 = arith.constant 0 : index
    %323 = vector.load %arg3[%c41, %c0_51] : memref<43x128xf32, #tpu.memory_space<vmem>>, vector<1x32xf32>
    %c42 = arith.constant 42 : index
    %c0_52 = arith.constant 0 : index
    %324 = vector.load %arg3[%c42, %c0_52] : memref<43x128xf32, #tpu.memory_space<vmem>>, vector<1x1xf32>
    %cst_53 = arith.constant dense<0.000000e+00> : vector<32x32xf32>
    %325 = tpu.matmul %320, %321, %cst_53 {dimension_numbers = #tpu.dot_dimension_numbers<[1], [0], [0], [1], [0, 0, 1, 1], [], []>} : vector<32x32xf32>, vector<32x32xf32>, vector<32x32xf32> -> vector<32x32xf32>
    %326 = vector.broadcast %322 : vector<1x32xf32> to vector<32x32xf32>
    %327 = arith.addf %325, %326 : vector<32x32xf32>
    %328 = math.tanh %327 : vector<32x32xf32>
    %329 = vector.broadcast %323 : vector<1x32xf32> to vector<32x32xf32>
    %330 = arith.mulf %328, %329 : vector<32x32xf32>
    %cst_54 = arith.constant dense<0.000000e+00> : vector<32xf32>
    %331 = vector.multi_reduction <add>, %330, %cst_54 [1] : vector<32x32xf32> to vector<32xf32>
    %332 = vector.shape_cast %331 : vector<32xf32> to vector<32x1xf32>
    %333 = vector.broadcast %324 : vector<1x1xf32> to vector<32x1xf32>
    %334 = arith.addf %332, %333 : vector<32x1xf32>
    %335 = arith.negf %334 : vector<32x1xf32>
    %336 = math.exp %335 : vector<32x1xf32>
    %cst_55 = arith.constant 1.000000e+00 : f32
    %337 = vector.broadcast %cst_55 : f32 to vector<32x1xf32>
    %338 = arith.addf %337, %336 : vector<32x1xf32>
    %339 = arith.divf %337, %338 : vector<32x1xf32>
    %c0_56 = arith.constant 0 : index
    %c0_57 = arith.constant 0 : index
    %340 = vector.load %arg4[%c0_56, %c0_57] : memref<32x1xf32, #tpu.memory_space<vmem>>, vector<32x1xf32>
    tpu.vector_store %arg4[%c0_56, %c0_57], %339 {strides = array<i32>} : memref<32x1xf32, #tpu.memory_space<vmem>>, vector<32x1xf32>,
    return
  }
}

</mosaic_0001>

<bundles_post_ra>
// kernel: tpu_custom_call.1
= control target key start
LH: loop header
LB: loop body
LE: loop exit
PB: predicated region body
PF: predicated region fallthrough
CT: control target
= control target key end

     0   :  { %9 = vsyncpa [#allocation3], 0  ;;  %s1718_s0 = inlined_call_operand.vmem [shape: f32[32,16], index: 0, kind: input, shape index: {}]   ;;  %s1719_s1 = inlined_call_operand.hbm [shape: f32[16,128], index: 1, kind: input, shape index: {}]   ;;  %s1720_s2 = inlined_call_operand.hbm [shape: f32[64,256], index: 2, kind: input, shape index: {}]   ;;  %s1721_s3 = inlined_call_operand.vmem [shape: f32[43,128], index: 3, kind: input, shape index: {}]   ;;  %s1722_s4 = inlined_call_operand.vmem [shape: f32[32,1], index: 4, kind: output, shape index: {}]  }
   0x1   :  { %s17_s17 = sshll.u32 %s1719_s1, 4  ;;  %s18_s17 = int_to_ptr.hbm [resolvable:$true] %s17_s17 }
   0x2   :  { %10 = vsyncpa [#allocation5], 0  ;;  %s1243_s18 = smov [#allocation2]   ;;  %s30_s22 = sshll.u32 %s1720_s2, 4  ;;  %s31_s22 = int_to_ptr.hbm [resolvable:$true] %s30_s22 }
   0x3   :  { %s19_s19 = sshll.u32 %s1243_s18, 4  ;;  %s1244_s23 = smov 128   ;;  %s20_s19 = int_to_ptr.vmem [resolvable:$true] %s19_s19 }
   0x4   :  { %s1245_s24 = smov 8   ;;  %s1246_s25 = smov [#allocation4]  }
   0x5   :  { %25 = dma.hbm_to_vmem [thread:$0]  %s18_s17, 256, %s20_s19, [#allocation3], %s1244_s23, %s1244_s23, %s1245_s24  }
   0x6   :  { %s32_s26 = sshll.u32 %s1246_s25, 4  ;;  %s1247_s27 = smov 256   ;;  %s33_s26 = int_to_ptr.vmem [resolvable:$true] %s32_s26 }
   0x7   :  { %s1248_s28 = smov 16  }
   0x8   :  { %38 = dma.hbm_to_vmem [thread:$0]  %s31_s22, 2048, %s33_s26, [#allocation5], %s1247_s27, %s1247_s27, %s1248_s28  }
   0x9   :  { %1239 = dma.done.wait [#allocation3], 256  }
   0xa   :  { %1240 = vsyncadd [#allocation3], 4294967040 }
   0xb   :  { %1241 = dma.done.wait [#allocation5], 2048  }
   0xc   :  { %1242 = vsyncadd [#allocation5], 4294965248  ;;  %v55_v0 = vld [vmem:[#allocation2 + $0x8] sm:$0xff]  ;;  %v54_v1 = vld [vmem:[#allocation2] sm:$0xff]  ;;  %vm57_vm0 = vcmask 130048   ;;  %v129_v5 = vlaneseq  ;;  %s1249_s5 = smov 64  }
   0xd   :  { %84 = vmatpush.msra.mxu0 %v55_v0  ;;  %v50_v2 = vld [vmem:[%s1718_s0] sm:$0xff]  ;;  %s1250_s6 = smov 32   ;;  %v1314_v20 = vld [vmem:[#allocation4 + $0x60] sm:$0xff]  ;;  %v1320_v22 = vld [vmem:[#allocation4 + $0x78] sm:$0xff]  ;;  %vm159_vm4 = vcmask 261120   ;;  %vm161_vm5 = vcmask 523264  }
   0xe   :  { %v1289_v3 = vld [vmem:[%s1721_s3] ss:$0 sm:$0xff]  ;;  %v130_v7 = vand.u32 127, %v129_v5  ;;  %289 = vmatpush.msra.mxu1 %v1320_v22  ;;  %v1325_v23 = vld [vmem:[#allocation4 + $0x40] sm:$0xff]  ;;  %v1327_v24 = vld [vmem:[#allocation4 + $0x68] sm:$0xff]  ;;  %vm888_vm6 = vcmask 1043456  }
   0xf   :  { %85 = vmatpush.msra.mxu0 %v54_v1  ;;  %v1312_v19 = vld [vmem:[#allocation4 + $0x70] sm:$0xff]  ;;  %v1335_v26 = vld [vmem:[#allocation4 + $0x58] sm:$0xff]  ;;  %v1341_v27 = vld [vmem:[#allocation4 + $0x20] sm:$0xff]  ;;  %vm1052_vm9 = vcmask 7168  }
  0x10   :  { %1063 = vmatmul.msk.f32.vlgmr.msra.gmra.mxu0 %vm57_vm0, %v50_v2  ;;  %vm131_vm1 = vcmp.ge.s32.totalorder %v130_v7, 64  ;;  %vm132_vm2 = vcmp.lt.s32.totalorder %v130_v7, 96  ;;  %173 = vmatpush.msra.mxu2 %v1312_v19  ;;  %v1318_v21 = vld [vmem:[#allocation4 + $0x50] sm:$0xff]  ;;  %v1351_v29 = vld [vmem:[#allocation4] sm:$0xff]  ;;  %v1377_v32 = vld [vmem:[#allocation4 + $0x48] sm:$0xff] }
  0x11   :  { %vm1295_vm3 = vmand %vm131_vm1, %vm132_vm2  ;;  %269 = vmatpush.msra.mxu3 %v1312_v19  ;;  %461 = vmatpush.msrb.mxu0 %v1312_v19  ;;  %v1333_v25 = vld [vmem:[#allocation4 + $0x30] sm:$0xff]  ;;  %v1381_v33 = vld [vmem:[#allocation4 + $0x38] sm:$0xff] }
  0x12   :  { %174 = vmatpush.msra.mxu2 %v1314_v20  ;;  %290 = vmatpush.msra.mxu1 %v1327_v24  ;;  %v1346_v28 = vld [vmem:[#allocation4 + $0x10] sm:$0xff]  ;;  %v1383_v34 = vld [vmem:[#allocation4 + $0x28] sm:$0xff]  ;;  %v1388_v35 = vld [vmem:[#allocation4 + $0x18] sm:$0xff] }
  0x13   :  { %270 = vmatpush.msra.mxu3 %v1314_v20  ;;  %462 = vmatpush.msrb.mxu0 %v1314_v20  ;;  %v1393_v36 = vld [vmem:[#allocation4 + $0x8] sm:$0xff]  ;;  %v1432_v40 = vld [vmem:[%s1721_s3 + $0x1] ss:$0 sm:$0xff] }
  0x14   :  { %175 = vmatpush.msra.mxu2 %v1318_v21  ;;  %291 = vmatpush.msra.mxu1 %v1335_v26  ;;  %v895_v10 = vld [vmem:[%s1721_s3 + $0x18] sm:$0xff] }
  0x15   :  { %271 = vmatpush.msra.mxu3 %v1318_v21  ;;  %463 = vmatpush.msrb.mxu0 %v1318_v21 }
  0x16   :  { %176 = vmatpush.msra.mxu2 %v1325_v23  ;;  %292 = vmatpush.msra.mxu1 %v1377_v32 }
  0x17   :  { %272 = vmatpush.msra.mxu3 %v1325_v23  ;;  %464 = vmatpush.msrb.mxu0 %v1325_v23 }
  0x18   :  { %177 = vmatpush.msra.mxu2 %v1333_v25  ;;  %293 = vmatpush.msra.mxu1 %v1381_v33 }
  0x19   :  { %273 = vmatpush.msra.mxu3 %v1333_v25  ;;  %465 = vmatpush.msrb.mxu0 %v1333_v25 }
  0x1a   :  { %178 = vmatpush.msra.mxu2 %v1341_v27  ;;  %294 = vmatpush.msra.mxu1 %v1383_v34 }
  0x1b   :  { %274 = vmatpush.msra.mxu3 %v1341_v27  ;;  %466 = vmatpush.msrb.mxu0 %v1341_v27 }
  0x1c   :  { %179 = vmatpush.msra.mxu2 %v1346_v28  ;;  %295 = vmatpush.msra.mxu1 %v1388_v35 }
  0x1d   :  { %275 = vmatpush.msra.mxu3 %v1346_v28  ;;  %467 = vmatpush.msrb.mxu0 %v1346_v28 }
  0x1e   :  { %180 = vmatpush.msra.mxu2 %v1351_v29  ;;  %296 = vmatpush.msra.mxu1 %v1393_v36 }
  0x1f   :  { %276 = vmatpush.msra.mxu3 %v1351_v29  ;;  %468 = vmatpush.msrb.mxu0 %v1351_v29 }
  0x20   :  { %193 = vmatpush.msrb.mxu2 %v1320_v22  ;;  %481 = vmatpush.msrb.mxu1 %v1320_v22 }
  0x21   :  { %385 = vmatpush.msrb.mxu3 %v1320_v22  ;;  %653 = vmatpush.msra.mxu0 %v1312_v19 }
  0x22   :  { %194 = vmatpush.msrb.mxu2 %v1327_v24  ;;  %482 = vmatpush.msrb.mxu1 %v1327_v24 }
  0x23   :  { %386 = vmatpush.msrb.mxu3 %v1327_v24  ;;  %654 = vmatpush.msra.mxu0 %v1314_v20 }
  0x24   :  { %195 = vmatpush.msrb.mxu2 %v1335_v26  ;;  %483 = vmatpush.msrb.mxu1 %v1335_v26 }
  0x25   :  { %387 = vmatpush.msrb.mxu3 %v1335_v26  ;;  %655 = vmatpush.msra.mxu0 %v1318_v21 }
  0x26   :  { %196 = vmatpush.msrb.mxu2 %v1377_v32  ;;  %484 = vmatpush.msrb.mxu1 %v1377_v32 }
  0x27   :  { %656 = vmatpush.msra.mxu0 %v1325_v23  ;;  %388 = vmatpush.msrb.mxu3 %v1377_v32 }
  0x28   :  { %197 = vmatpush.msrb.mxu2 %v1381_v33  ;;  %485 = vmatpush.msrb.mxu1 %v1381_v33 }
  0x29   :  { %657 = vmatpush.msra.mxu0 %v1333_v25  ;;  %389 = vmatpush.msrb.mxu3 %v1381_v33 }
  0x2a   :  { %198 = vmatpush.msrb.mxu2 %v1383_v34  ;;  %486 = vmatpush.msrb.mxu1 %v1383_v34 }
  0x2b   :  { %658 = vmatpush.msra.mxu0 %v1341_v27  ;;  %390 = vmatpush.msrb.mxu3 %v1383_v34 }
  0x2c   :  { %199 = vmatpush.msrb.mxu2 %v1388_v35  ;;  %487 = vmatpush.msrb.mxu1 %v1388_v35 }
  0x2d   :  { %659 = vmatpush.msra.mxu0 %v1346_v28  ;;  %391 = vmatpush.msrb.mxu3 %v1388_v35 }
  0x2e   :  { %200 = vmatpush.msrb.mxu2 %v1393_v36  ;;  %488 = vmatpush.msrb.mxu1 %v1393_v36 }
  0x2f   :  { %660 = vmatpush.msra.mxu0 %v1351_v29  ;;  %392 = vmatpush.msrb.mxu3 %v1393_v36 }
  0x8d   :  { %v87_v4 = vpop.f32.mrf.mxu0 }
  0x8e   :  { %v1292_v6 = vadd.f32 %v1289_v3, %v87_v4 }
  0x90   :  { %1103 = vtanh.f32 %v1292_v6  ;;  %v103_v41 = vrot.slane %v1292_v6, 4  ;;  %v51_v6 = vld [vmem:[%s1718_s0 + $0x8] sm:$0xff] }
  0x91   :  { %1064 = vmatmul.msk.f32.gmra.mxu0 %vm57_vm0, %v51_v6 }
  0x96   :  { %v1104_v8 = vpop.eup %1103 }
  0x97   :  { %v135_v9 = vadd.f32 1.0, %v1104_v8 }
  0x99   :  { %v136_v11 = vmul.f32 0.5, %v135_v9 }
  0x9b   :  { %v1301_v12 = vsel %vm1295_vm3, %v1104_v8, %v136_v11 }
  0x9c   :  { %140 = vrot.lane.b32.xlu0 %v1301_v12, %s1249_s5  ;;  %v138_v15 = vmul.f32 0.0, %v1301_v12 }
 0x10e   :  { %v141_v13 = vpop.permute.xlu0 %140 }
 0x10f   :  { %v143_v14 = vmul.f32 %v141_v13, %v1301_v12 }
 0x111   :  { %145 = vrot.lane.b32.xlu0 %v143_v14, %s1250_s6 }
 0x183   :  { %v146_v16 = vpop.permute.xlu0 %145 }
 0x184   :  { %v1308_v17 = vadd.f32 %v146_v16, %v138_v15 }
 0x186   :  { %1105 = vtanh.f32 %v1308_v17 }
 0x18c   :  { %v1106_v18 = vpop.eup %1105 }
 0x18d   :  { %151 = vrot.lane.b32.xlu1 %v1106_v18, %s1249_s5 }
 0x1ff   :  { %v152_v30 = vpop.permute.xlu1 %151 }
 0x200   :  { %v154_v31 = vmul.f32 %v152_v30, %v1301_v12  ;;  %v90_v12 = vpop.f32.mrf.mxu0 }
 0x201   :  { %v1483_v14 = vadd.f32 %v1289_v3, %v90_v12 }
 0x202   :  { %156 = vrot.lane.b32.xlu1 %v154_v31, %s1250_s6 }
 0x274   :  { %v157_v37 = vpop.permute.xlu1 %156 }
 0x275   :  { %v160_v38 = vsel %vm159_vm4, %v157_v37, 0.0 }
 0x276   :  { %1067 = vmatmul.msk.f32.vlgmr.msra.gmra.mxu2 %vm161_vm5, %v160_v38 }
 0x277   :  { %365 = vmatpush.msra.mxu2 %v1312_v19 }
 0x279   :  { %366 = vmatpush.msra.mxu2 %v1314_v20 }
 0x27b   :  { %367 = vmatpush.msra.mxu2 %v1318_v21 }
 0x27d   :  { %368 = vmatpush.msra.mxu2 %v1325_v23 }
 0x27e   :  { %1068 = vmatmul.msk.f32.vlgmr.msrb.gmra.mxu2 %vm161_vm5, %v160_v38 }
 0x27f   :  { %369 = vmatpush.msra.mxu2 %v1333_v25 }
 0x281   :  { %370 = vmatpush.msra.mxu2 %v1341_v27 }
 0x283   :  { %371 = vmatpush.msra.mxu2 %v1346_v28 }
 0x285   :  { %372 = vmatpush.msra.mxu2 %v1351_v29 }
 0x287   :  { %557 = vmatpush.msrb.mxu2 %v1312_v19 }
 0x289   :  { %558 = vmatpush.msrb.mxu2 %v1314_v20 }
 0x28b   :  { %559 = vmatpush.msrb.mxu2 %v1318_v21 }
 0x28d   :  { %560 = vmatpush.msrb.mxu2 %v1325_v23 }
 0x28f   :  { %561 = vmatpush.msrb.mxu2 %v1333_v25 }
 0x291   :  { %562 = vmatpush.msrb.mxu2 %v1341_v27 }
 0x293   :  { %563 = vmatpush.msrb.mxu2 %v1346_v28 }
 0x295   :  { %564 = vmatpush.msrb.mxu2 %v1351_v29 }
 0x2f9   :  { %v182_v39 = vpop.f32.mrf.mxu2 }
 0x2fa   :  { %v227_v43 = vadd.f32 %v182_v39, %v103_v41 }
 0x301   :  { %v202_v42 = vpop.f32.mrf.mxu2 }
 0x302   :  { %v205_v44 = vadd.f32 %v1432_v40, %v202_v42 }
 0x304   :  { %1107 = vtanh.f32 %v205_v44 }
 0x305   :  { %1109 = vtanh.f32 %v227_v43 }
 0x30a   :  { %v1108_v45 = vpop.eup %1107 }
 0x30b   :  { %v207_v46 = vadd.f32 1.0, %v1108_v45  ;;  %v1110_v47 = vpop.eup %1109 }
 0x30c   :  { %v229_v49 = vadd.f32 1.0, %v1110_v47 }
 0x30d   :  { %v208_v48 = vmul.f32 0.5, %v207_v46 }
 0x30e   :  { %v230_v51 = vmul.f32 0.5, %v229_v49 }
 0x30f   :  { %v209_v50 = vsel %vm1295_vm3, %v1108_v45, %v208_v48 }
 0x310   :  { %212 = vrot.lane.b32.xlu2 %v209_v50, %s1249_s5  ;;  %v231_v52 = vsel %vm1295_vm3, %v1110_v47, %v230_v51  ;;  %v210_v57 = vmul.f32 0.0, %v209_v50 }
 0x311   :  { %v232_v60 = vmul.f32 %v231_v52, %v1308_v17 }
 0x318   :  { %234 = vrot.lane.b32.xlu2 %v231_v52, %s1249_s5 }
 0x36a   :  { %v213_v53 = vpop.permute.xlu2 %212 }
 0x36b   :  { %v215_v54 = vmul.f32 %v213_v53, %v209_v50 }
 0x36d   :  { %217 = vrot.lane.b32.xlu0 %v215_v54, %s1250_s6 }
 0x372   :  { %v235_v55 = vpop.permute.xlu2 %234 }
 0x373   :  { %v237_v56 = vmul.f32 %v235_v55, %v231_v52 }
 0x375   :  { %239 = vrot.lane.b32.xlu1 %v237_v56, %s1250_s6 }
 0x3df   :  { %v218_v58 = vpop.permute.xlu0 %217 }
 0x3e0   :  { %v1444_v59 = vadd.f32 %v218_v58, %v210_v57 }
 0x3e2   :  { %1111 = vtanh.f32 %v1444_v59 }
 0x3e7   :  { %v240_v61 = vpop.permute.xlu1 %239 }
 0x3e8   :  { %v1112_v62 = vpop.eup %1111  ;;  %v1448_v63 = vadd.f32 %v240_v61, %v232_v60 }
 0x3e9   :  { %223 = vrot.lane.b32.xlu2 %v1112_v62, %s1249_s5 }
 0x3ea   :  { %1113 = vtanh.f32 %v1448_v63 }
 0x3f0   :  { %v1114_v0 = vpop.eup %1113 }
 0x3f1   :  { %245 = vrot.lane.b32.xlu0 %v1114_v0, %s1249_s5 }
 0x443   :  { %v224_v1 = vpop.permute.xlu2 %223 }
 0x444   :  { %v1453_v2 = vmul.f32 %v224_v1, %v209_v50 }
 0x446   :  { %254 = vrot.lane.b32.xlu2 %v1453_v2, %s1249_s5 }
 0x463   :  { %v246_v4 = vpop.permute.xlu0 %245 }
 0x464   :  { %v248_v5 = vmul.f32 %v246_v4, %v231_v52 }
 0x466   :  { %250 = vrot.lane.b32.xlu1 %v248_v5, %s1250_s6 }
 0x4a0   :  { %v255_v7 = vpop.permute.xlu2 %254 }
 0x4d8   :  { %v251_v8 = vpop.permute.xlu1 %250 }
 0x4d9   :  { %v257_v9 = vsel %vm159_vm4, %v251_v8, %v255_v7 }
 0x4da   :  { %1069 = vmatmul.msk.f32.vlgmr.msra.gmra.mxu3 %vm161_vm5, %v257_v9  ;;  %1070 = vmatmul.msk.f32.vlgmr.msra.gmra.mxu1 %vm161_vm5, %v257_v9 }
 0x4db   :  { %577 = vmatpush.msra.mxu3 %v1320_v22  ;;  %673 = vmatpush.msra.mxu1 %v1320_v22 }
 0x4dd   :  { %578 = vmatpush.msra.mxu3 %v1327_v24  ;;  %674 = vmatpush.msra.mxu1 %v1327_v24 }
 0x4df   :  { %579 = vmatpush.msra.mxu3 %v1335_v26  ;;  %675 = vmatpush.msra.mxu1 %v1335_v26 }
 0x4e1   :  { %580 = vmatpush.msra.mxu3 %v1377_v32  ;;  %676 = vmatpush.msra.mxu1 %v1377_v32 }
 0x4e3   :  { %581 = vmatpush.msra.mxu3 %v1381_v33  ;;  %677 = vmatpush.msra.mxu1 %v1381_v33 }
 0x4e5   :  { %582 = vmatpush.msra.mxu3 %v1383_v34  ;;  %678 = vmatpush.msra.mxu1 %v1383_v34 }
 0x4e7   :  { %583 = vmatpush.msra.mxu3 %v1388_v35  ;;  %679 = vmatpush.msra.mxu1 %v1388_v35 }
 0x4e9   :  { %584 = vmatpush.msra.mxu3 %v1393_v36  ;;  %680 = vmatpush.msra.mxu1 %v1393_v36 }
 0x557   :  { %v298_v11 = vpop.f32.mrf.mxu1 }
 0x558   :  { %v301_v13 = vadd.f32 %v1432_v40, %v298_v11 }
 0x55a   :  { %1115 = vtanh.f32 %v301_v13 }
 0x55d   :  { %v278_v15 = vpop.f32.mrf.mxu3 }
 0x55e   :  { %v323_v16 = vadd.f32 %v278_v15, %v1483_v14 }
 0x560   :  { %v1116_v17 = vpop.eup %1115  ;;  %1117 = vtanh.f32 %v323_v16 }
 0x561   :  { %v303_v18 = vadd.f32 1.0, %v1116_v17 }
 0x563   :  { %v304_v30 = vmul.f32 0.5, %v303_v18 }
 0x565   :  { %v305_v31 = vsel %vm1295_vm3, %v1116_v17, %v304_v30 }
 0x566   :  { %v1118_v37 = vpop.eup %1117  ;;  %308 = vrot.lane.b32.xlu0 %v305_v31, %s1249_s5  ;;  %v306_v46 = vmul.f32 %v305_v31, %v1444_v59 }
 0x567   :  { %v325_v38 = vadd.f32 1.0, %v1118_v37 }
 0x569   :  { %v326_v39 = vmul.f32 0.5, %v325_v38  ;;  %v53_v38 = vld [vmem:[%s1718_s0 + $0x18] sm:$0xff] }
 0x56b   :  { %v327_v41 = vsel %vm1295_vm3, %v1118_v37, %v326_v39  ;;  %v52_v37 = vld [vmem:[%s1718_s0 + $0x10] sm:$0xff] }
 0x56c   :  { %330 = vrot.lane.b32.xlu1 %v327_v41, %s1249_s5  ;;  %v328_v50 = vmul.f32 %v327_v41, %v1448_v63  ;;  %1065 = vmatmul.msk.f32.gmra.mxu0 %vm57_vm0, %v52_v37 }
 0x574   :  { %1066 = vmatmul.msk.f32.gmra.mxu0 %vm57_vm0, %v53_v38 }
 0x5d8   :  { %v309_v42 = vpop.permute.xlu0 %308 }
 0x5d9   :  { %v311_v43 = vmul.f32 %v309_v42, %v305_v31 }
 0x5db   :  { %313 = vrot.lane.b32.xlu2 %v311_v43, %s1250_s6 }
 0x5de   :  { %v331_v44 = vpop.permute.xlu1 %330 }
 0x5df   :  { %v333_v45 = vmul.f32 %v331_v44, %v327_v41 }
 0x5e1   :  { %335 = vrot.lane.b32.xlu0 %v333_v45, %s1250_s6 }
 0x5e9   :  { %v93_v43 = vpop.f32.mrf.mxu0 }
 0x5ea   :  { %v94_v45 = vadd.f32 %v1289_v3, %v93_v43 }
 0x5f1   :  { %v1558_v44 = vpop.f32.mrf.mxu0 }
 0x635   :  { %v314_v47 = vpop.permute.xlu2 %313 }
 0x636   :  { %v316_v48 = vadd.f32 %v314_v47, %v306_v46 }
 0x638   :  { %1119 = vtanh.f32 %v316_v48 }
 0x63e   :  { %v1120_v49 = vpop.eup %1119 }
 0x63f   :  { %319 = vrot.lane.b32.xlu1 %v1120_v49, %s1249_s5 }
 0x653   :  { %v336_v51 = vpop.permute.xlu0 %335 }
 0x654   :  { %v338_v52 = vadd.f32 %v336_v51, %v328_v50 }
 0x656   :  { %1121 = vtanh.f32 %v338_v52 }
 0x65c   :  { %v1122_v53 = vpop.eup %1121 }
 0x65d   :  { %341 = vrot.lane.b32.xlu2 %v1122_v53, %s1249_s5 }
 0x6b1   :  { %v320_v54 = vpop.permute.xlu1 %319 }
 0x6b2   :  { %v1498_v55 = vmul.f32 %v320_v54, %v305_v31 }
 0x6b4   :  { %350 = vrot.lane.b32.xlu1 %v1498_v55, %s1249_s5 }
 0x6b7   :  { %v342_v56 = vpop.permute.xlu2 %341 }
 0x6b8   :  { %v344_v57 = vmul.f32 %v342_v56, %v327_v41 }
 0x6ba   :  { %346 = vrot.lane.b32.xlu0 %v344_v57, %s1250_s6 }
 0x726   :  { %v351_v58 = vpop.permute.xlu1 %350 }
 0x72c   :  { %v347_v59 = vpop.permute.xlu0 %346 }
 0x72d   :  { %v353_v60 = vsel %vm159_vm4, %v347_v59, %v351_v58 }
 0x72e   :  { %1071 = vmatmul.msk.f32.vlgmr.msra.gmra.mxu2 %vm161_vm5, %v353_v60  ;;  %1072 = vmatmul.msk.f32.vlgmr.msrb.gmra.mxu3 %vm161_vm5, %v353_v60 }
 0x72f   :  { %749 = vmatpush.msra.mxu2 %v1312_v19  ;;  %769 = vmatpush.msrb.mxu3 %v1320_v22  ;;  %v104_v19 = vrot.slane %v1483_v14, 4 }
 0x731   :  { %750 = vmatpush.msra.mxu2 %v1314_v20  ;;  %770 = vmatpush.msrb.mxu3 %v1327_v24 }
 0x733   :  { %751 = vmatpush.msra.mxu2 %v1318_v21  ;;  %771 = vmatpush.msrb.mxu3 %v1335_v26 }
 0x735   :  { %752 = vmatpush.msra.mxu2 %v1325_v23  ;;  %772 = vmatpush.msrb.mxu3 %v1377_v32 }
 0x737   :  { %753 = vmatpush.msra.mxu2 %v1333_v25  ;;  %773 = vmatpush.msrb.mxu3 %v1381_v33 }
 0x739   :  { %754 = vmatpush.msra.mxu2 %v1341_v27  ;;  %774 = vmatpush.msrb.mxu3 %v1383_v34 }
 0x73b   :  { %755 = vmatpush.msra.mxu2 %v1346_v28  ;;  %775 = vmatpush.msrb.mxu3 %v1388_v35 }
 0x73d   :  { %756 = vmatpush.msra.mxu2 %v1351_v29  ;;  %776 = vmatpush.msrb.mxu3 %v1393_v36 }
 0x7b1   :  { %v374_v20 = vpop.f32.mrf.mxu2  ;;  %v394_v21 = vpop.f32.mrf.mxu3 }
 0x7b2   :  { %v419_v23 = vadd.f32 %v374_v20, %v104_v19  ;;  %v397_v25 = vadd.f32 %v1432_v40, %v394_v21 }
 0x7b4   :  { %1123 = vtanh.f32 %v419_v23 }
 0x7b5   :  { %1125 = vtanh.f32 %v397_v25 }
 0x7ba   :  { %v1124_v27 = vpop.eup %1123 }
 0x7bb   :  { %v1126_v61 = vpop.eup %1125  ;;  %v421_v62 = vadd.f32 1.0, %v1124_v27 }
 0x7bc   :  { %v399_v63 = vadd.f32 1.0, %v1126_v61 }
 0x7bd   :  { %v422_v28 = vmul.f32 0.5, %v421_v62 }
 0x7be   :  { %v400_v0 = vmul.f32 0.5, %v399_v63 }
 0x7bf   :  { %v423_v29 = vsel %vm1295_vm3, %v1124_v27, %v422_v28  ;;  %v105_v28 = vrot.slane %v94_v45, 4 }
 0x7c0   :  { %v401_v1 = vsel %vm1295_vm3, %v1126_v61, %v400_v0  ;;  %426 = vrot.lane.b32.xlu0 %v423_v29, %s1249_s5  ;;  %v424_v8 = vmul.f32 %v423_v29, %v338_v52 }
 0x7c1   :  { %404 = vrot.lane.b32.xlu2 %v401_v1, %s1249_s5  ;;  %v402_v9 = vmul.f32 %v401_v1, %v316_v48 }
 0x81b   :  { %v405_v4 = vpop.permute.xlu2 %404 }
 0x81c   :  { %v407_v5 = vmul.f32 %v405_v4, %v401_v1 }
 0x81e   :  { %409 = vrot.lane.b32.xlu1 %v407_v5, %s1250_s6 }
 0x832   :  { %v427_v6 = vpop.permute.xlu0 %426 }
 0x833   :  { %v429_v7 = vmul.f32 %v427_v6, %v423_v29 }
 0x835   :  { %431 = vrot.lane.b32.xlu2 %v429_v7, %s1250_s6 }
 0x88f   :  { %v432_v11 = vpop.permute.xlu2 %431 }
 0x890   :  { %v410_v12 = vpop.permute.xlu1 %409  ;;  %v434_v13 = vadd.f32 %v432_v11, %v424_v8 }
 0x891   :  { %v412_v14 = vadd.f32 %v410_v12, %v402_v9 }
 0x892   :  { %1127 = vtanh.f32 %v434_v13 }
 0x893   :  { %1129 = vtanh.f32 %v412_v14 }
 0x898   :  { %v1128_v15 = vpop.eup %1127 }
 0x899   :  { %v1130_v16 = vpop.eup %1129  ;;  %437 = vrot.lane.b32.xlu1 %v1128_v15, %s1249_s5 }
 0x89a   :  { %415 = vrot.lane.b32.xlu0 %v1130_v16, %s1249_s5 }
 0x90b   :  { %v438_v17 = vpop.permute.xlu1 %437 }
 0x90c   :  { %v416_v18 = vpop.permute.xlu0 %415  ;;  %v440_v30 = vmul.f32 %v438_v17, %v423_v29 }
 0x90d   :  { %v1534_v31 = vmul.f32 %v416_v18, %v401_v1 }
 0x90e   :  { %442 = vrot.lane.b32.xlu2 %v440_v30, %s1250_s6 }
 0x90f   :  { %446 = vrot.lane.b32.xlu0 %v1534_v31, %s1249_s5 }
 0x968   :  { %v443_v39 = vpop.permute.xlu2 %442 }
 0x981   :  { %v447_v41 = vpop.permute.xlu0 %446 }
 0x982   :  { %v449_v42 = vsel %vm159_vm4, %v443_v39, %v447_v41 }
 0x983   :  { %1073 = vmatmul.msk.f32.vlgmr.msrb.gmra.mxu0 %vm161_vm5, %v449_v42  ;;  %1074 = vmatmul.msk.f32.vlgmr.msrb.gmra.mxu1 %vm161_vm5, %v449_v42 }
 0x984   :  { %845 = vmatpush.msrb.mxu0 %v1320_v22 }
 0x986   :  { %846 = vmatpush.msrb.mxu0 %v1327_v24 }
 0x988   :  { %847 = vmatpush.msrb.mxu0 %v1335_v26 }
 0x98a   :  { %848 = vmatpush.msrb.mxu0 %v1377_v32 }
 0x98c   :  { %849 = vmatpush.msrb.mxu0 %v1381_v33 }
 0x98e   :  { %850 = vmatpush.msrb.mxu0 %v1383_v34 }
 0x990   :  { %851 = vmatpush.msrb.mxu0 %v1388_v35 }
 0x992   :  { %852 = vmatpush.msrb.mxu0 %v1393_v36 }
 0xa00   :  { %v470_v22 = vpop.f32.mrf.mxu0  ;;  %v490_v46 = vpop.f32.mrf.mxu1 }
 0xa01   :  { %v515_v24 = vadd.f32 %v470_v22, %v94_v45  ;;  %v493_v26 = vadd.f32 %v1432_v40, %v490_v46 }
 0xa03   :  { %1131 = vtanh.f32 %v515_v24 }
 0xa04   :  { %1133 = vtanh.f32 %v493_v26 }
 0xa09   :  { %v1132_v32 = vpop.eup %1131 }
 0xa0a   :  { %v1134_v33 = vpop.eup %1133  ;;  %v517_v47 = vadd.f32 1.0, %v1132_v32 }
 0xa0b   :  { %v495_v34 = vadd.f32 1.0, %v1134_v33 }
 0xa0c   :  { %v518_v48 = vmul.f32 0.5, %v517_v47  ;;  %v97_v47 = vadd.f32 %v1289_v3, %v1558_v44 }
 0xa0d   :  { %v496_v35 = vmul.f32 0.5, %v495_v34 }
 0xa0e   :  { %v519_v36 = vsel %vm1295_vm3, %v1132_v32, %v518_v48 }
 0xa0f   :  { %v497_v49 = vsel %vm1295_vm3, %v1134_v33, %v496_v35  ;;  %522 = vrot.lane.b32.xlu2 %v519_v36, %s1249_s5  ;;  %v520_v54 = vmul.f32 %v519_v36, %v434_v13 }
 0xa10   :  { %500 = vrot.lane.b32.xlu1 %v497_v49, %s1249_s5  ;;  %v498_v59 = vmul.f32 %v497_v49, %v412_v14 }
 0xa69   :  { %v523_v50 = vpop.permute.xlu2 %522 }
 0xa6a   :  { %v525_v51 = vmul.f32 %v523_v50, %v519_v36 }
 0xa6c   :  { %527 = vrot.lane.b32.xlu1 %v525_v51, %s1250_s6 }
 0xa82   :  { %v501_v52 = vpop.permute.xlu1 %500 }
 0xa83   :  { %v503_v53 = vmul.f32 %v501_v52, %v497_v49 }
 0xa85   :  { %505 = vrot.lane.b32.xlu0 %v503_v53, %s1250_s6 }
 0xade   :  { %v528_v56 = vpop.permute.xlu1 %527 }
 0xadf   :  { %v530_v57 = vadd.f32 %v528_v56, %v520_v54 }
 0xae1   :  { %1135 = vtanh.f32 %v530_v57 }
 0xae7   :  { %v1136_v58 = vpop.eup %1135 }
 0xae8   :  { %533 = vrot.lane.b32.xlu0 %v1136_v58, %s1249_s5 }
 0xaf7   :  { %v506_v60 = vpop.permute.xlu0 %505 }
 0xaf8   :  { %v508_v19 = vadd.f32 %v506_v60, %v498_v59 }
 0xafa   :  { %1137 = vtanh.f32 %v508_v19 }
 0xb00   :  { %v1138_v20 = vpop.eup %1137 }
 0xb01   :  { %511 = vrot.lane.b32.xlu2 %v1138_v20, %s1249_s5 }
 0xb5a   :  { %v534_v21 = vpop.permute.xlu0 %533 }
 0xb5b   :  { %v512_v23 = vpop.permute.xlu2 %511  ;;  %v536_v25 = vmul.f32 %v534_v21, %v519_v36 }
 0xb5c   :  { %v1572_v27 = vmul.f32 %v512_v23, %v497_v49 }
 0xb5d   :  { %538 = vrot.lane.b32.xlu1 %v536_v25, %s1250_s6 }
 0xb5e   :  { %542 = vrot.lane.b32.xlu2 %v1572_v27, %s1249_s5 }
 0xbb8   :  { %v543_v61 = vpop.permute.xlu2 %542 }
 0xbcf   :  { %v539_v62 = vpop.permute.xlu1 %538 }
 0xbd0   :  { %v545_v63 = vsel %vm159_vm4, %v539_v62, %v543_v61 }
 0xbd1   :  { %1075 = vmatmul.msk.f32.vlgmr.msrb.gmra.mxu2 %vm161_vm5, %v545_v63  ;;  %1076 = vmatmul.msk.f32.vlgmr.msra.gmra.mxu3 %vm161_vm5, %v545_v63 }
 0xc54   :  { %v566_v0 = vpop.f32.mrf.mxu2  ;;  %v586_v29 = vpop.f32.mrf.mxu3 }
 0xc55   :  { %v611_v1 = vadd.f32 %v566_v0, %v105_v28  ;;  %v589_v4 = vadd.f32 %v1432_v40, %v586_v29 }
 0xc57   :  { %1139 = vtanh.f32 %v611_v1 }
 0xc58   :  { %1141 = vtanh.f32 %v589_v4 }
 0xc5d   :  { %v1140_v5 = vpop.eup %1139 }
 0xc5e   :  { %v1142_v6 = vpop.eup %1141  ;;  %v613_v7 = vadd.f32 1.0, %v1140_v5 }
 0xc5f   :  { %v591_v8 = vadd.f32 1.0, %v1142_v6 }
 0xc60   :  { %v614_v9 = vmul.f32 0.5, %v613_v7 }
 0xc61   :  { %v592_v11 = vmul.f32 0.5, %v591_v8 }
 0xc62   :  { %v615_v12 = vsel %vm1295_vm3, %v1140_v5, %v614_v9 }
 0xc63   :  { %v593_v13 = vsel %vm1295_vm3, %v1142_v6, %v592_v11  ;;  %618 = vrot.lane.b32.xlu1 %v615_v12, %s1249_s5  ;;  %v616_v39 = vmul.f32 %v615_v12, %v530_v57  ;;  %v106_v6 = vrot.slane %v97_v47, 4 }
 0xc64   :  { %596 = vrot.lane.b32.xlu0 %v593_v13, %s1249_s5  ;;  %v594_v18 = vmul.f32 %v593_v13, %v508_v19 }
 0xcd5   :  { %v619_v14 = vpop.permute.xlu1 %618 }
 0xcd6   :  { %v597_v15 = vpop.permute.xlu0 %596  ;;  %v621_v16 = vmul.f32 %v619_v14, %v615_v12 }
 0xcd7   :  { %v599_v17 = vmul.f32 %v597_v15, %v593_v13 }
 0xcd8   :  { %623 = vrot.lane.b32.xlu0 %v621_v16, %s1250_s6 }
 0xcd9   :  { %601 = vrot.lane.b32.xlu2 %v599_v17, %s1250_s6 }
 0xd33   :  { %v602_v30 = vpop.permute.xlu2 %601 }
 0xd34   :  { %v604_v37 = vadd.f32 %v602_v30, %v594_v18 }
 0xd36   :  { %1143 = vtanh.f32 %v604_v37 }
 0xd3c   :  { %v1144_v38 = vpop.eup %1143 }
 0xd3d   :  { %607 = vrot.lane.b32.xlu1 %v1144_v38, %s1249_s5 }
 0xd4a   :  { %v624_v41 = vpop.permute.xlu0 %623 }
 0xd4b   :  { %v626_v42 = vadd.f32 %v624_v41, %v616_v39 }
 0xd4d   :  { %1145 = vtanh.f32 %v626_v42 }
 0xd53   :  { %v1146_v43 = vpop.eup %1145 }
 0xd54   :  { %629 = vrot.lane.b32.xlu2 %v1146_v43, %s1249_s5 }
 0xdae   :  { %v630_v45 = vpop.permute.xlu2 %629 }
 0xdaf   :  { %v608_v22 = vpop.permute.xlu1 %607  ;;  %v632_v46 = vmul.f32 %v630_v45, %v615_v12 }
 0xdb0   :  { %v1591_v24 = vmul.f32 %v608_v22, %v593_v13 }
 0xdb1   :  { %634 = vrot.lane.b32.xlu0 %v632_v46, %s1250_s6 }
 0xdb2   :  { %638 = vrot.lane.b32.xlu1 %v1591_v24, %s1249_s5 }
 0xe23   :  { %v635_v26 = vpop.permute.xlu0 %634 }
 0xe24   :  { %v639_v32 = vpop.permute.xlu1 %638 }
 0xe25   :  { %v641_v33 = vsel %vm159_vm4, %v635_v26, %v639_v32 }
 0xe26   :  { %1077 = vmatmul.msk.f32.vlgmr.msra.gmra.mxu0 %vm161_vm5, %v641_v33  ;;  %1078 = vmatmul.msk.f32.vlgmr.msra.gmra.mxu1 %vm161_vm5, %v641_v33 }
 0xea3   :  { %v662_v34 = vpop.f32.mrf.mxu0  ;;  %v682_v48 = vpop.f32.mrf.mxu1 }
 0xea4   :  { %v707_v35 = vadd.f32 %v662_v34, %v97_v47  ;;  %v685_v36 = vadd.f32 %v1432_v40, %v682_v48 }
 0xea6   :  { %1147 = vtanh.f32 %v707_v35 }
 0xea7   :  { %1149 = vtanh.f32 %v685_v36 }
 0xeac   :  { %v1148_v49 = vpop.eup %1147 }
 0xead   :  { %v1150_v50 = vpop.eup %1149  ;;  %v709_v51 = vadd.f32 1.0, %v1148_v49 }
 0xeae   :  { %v687_v52 = vadd.f32 1.0, %v1150_v50 }
 0xeaf   :  { %v710_v53 = vmul.f32 0.5, %v709_v51 }
 0xeb0   :  { %v688_v54 = vmul.f32 0.5, %v687_v52 }
 0xeb1   :  { %v711_v56 = vsel %vm1295_vm3, %v1148_v49, %v710_v53 }
 0xeb2   :  { %v689_v57 = vsel %vm1295_vm3, %v1150_v50, %v688_v54  ;;  %714 = vrot.lane.b32.xlu0 %v711_v56, %s1249_s5  ;;  %v712_v60 = vmul.f32 %v711_v56, %v626_v42 }
 0xeb3   :  { %692 = vrot.lane.b32.xlu2 %v689_v57, %s1249_s5  ;;  %v690_v19 = vmul.f32 %v689_v57, %v604_v37 }
 0xf0d   :  { %v693_v3 = vpop.permute.xlu2 %692 }
 0xf0e   :  { %v695_v44 = vmul.f32 %v693_v3, %v689_v57  ;;  %v879_v3 = vrot.slane %v1498_v55, 4 }
 0xf10   :  { %697 = vrot.lane.b32.xlu1 %v695_v44, %s1250_s6  ;;  %v889_v44 = vsel %vm888_vm6, %v1453_v2, %v879_v3  ;;  %v893_v2 = vld [vmem:[%s1721_s3 + $0x8] sm:$0xff] }
 0xf24   :  { %v715_v58 = vpop.permute.xlu0 %714 }
 0xf25   :  { %v717_v59 = vmul.f32 %v715_v58, %v711_v56  ;;  %v894_v58 = vld [vmem:[%s1721_s3 + $0x10] sm:$0xff] }
 0xf27   :  { %719 = vrot.lane.b32.xlu2 %v717_v59, %s1250_s6 }
 0xf81   :  { %v720_v20 = vpop.permute.xlu2 %719 }
 0xf82   :  { %v698_v21 = vpop.permute.xlu1 %697  ;;  %v722_v23 = vadd.f32 %v720_v20, %v712_v60  ;;  %v881_v60 = vrot.slane %v1572_v27, 4 }
 0xf83   :  { %v700_v25 = vadd.f32 %v698_v21, %v690_v19 }
 0xf84   :  { %1151 = vtanh.f32 %v722_v23  ;;  %v890_v20 = vsel %vm888_vm6, %v1534_v31, %v881_v60 }
 0xf85   :  { %1153 = vtanh.f32 %v700_v25 }
 0xf8a   :  { %v1152_v61 = vpop.eup %1151 }
 0xf8b   :  { %v1154_v62 = vpop.eup %1153  ;;  %725 = vrot.lane.b32.xlu1 %v1152_v61, %s1249_s5 }
 0xf8c   :  { %703 = vrot.lane.b32.xlu0 %v1154_v62, %s1249_s5 }
 0xffd   :  { %v726_v63 = vpop.permute.xlu1 %725 }
 0xffe   :  { %v704_v28 = vpop.permute.xlu0 %703  ;;  %v728_v0 = vmul.f32 %v726_v63, %v711_v56  ;;  %v1667_v63 = vld [vmem:[%s1721_s3 + $0x28] ss:$0 sm:$0xff] }
 0xfff   :  { %v1612_v29 = vmul.f32 %v704_v28, %v689_v57 }
0x1000   :  { %730 = vrot.lane.b32.xlu2 %v728_v0, %s1250_s6 }
0x1001   :  { %734 = vrot.lane.b32.xlu0 %v1612_v29, %s1249_s5  ;;  %v883_v27 = vrot.slane %v1612_v29, 4 }
0x1003   :  { %v891_v28 = vsel %vm888_vm6, %v1591_v24, %v883_v27 }
0x105a   :  { %v731_v1 = vpop.permute.xlu2 %730 }
0x1073   :  { %v735_v4 = vpop.permute.xlu0 %734 }
0x1074   :  { %v737_v5 = vsel %vm159_vm4, %v731_v1, %v735_v4  ;;  %v1676_v1 = vld [vmem:[%s1721_s3 + $0x29] ss:$0 sm:$0xff] }
0x1075   :  { %1079 = vmatmul.msk.f32.vlgmr.msra.gmra.mxu2 %vm161_vm5, %v737_v5  ;;  %1080 = vmatmul.msk.f32.vlgmr.msrb.gmra.mxu3 %vm161_vm5, %v737_v5 }
0x10f8   :  { %v758_v7 = vpop.f32.mrf.mxu2  ;;  %v778_v8 = vpop.f32.mrf.mxu3 }
0x10f9   :  { %v803_v9 = vadd.f32 %v758_v7, %v106_v6  ;;  %v781_v11 = vadd.f32 %v1432_v40, %v778_v8 }
0x10fb   :  { %1155 = vtanh.f32 %v803_v9 }
0x10fc   :  { %1157 = vtanh.f32 %v781_v11 }
0x1101   :  { %v1156_v12 = vpop.eup %1155 }
0x1102   :  { %v1158_v13 = vpop.eup %1157  ;;  %v805_v14 = vadd.f32 1.0, %v1156_v12 }
0x1103   :  { %v783_v15 = vadd.f32 1.0, %v1158_v13 }
0x1104   :  { %v806_v16 = vmul.f32 0.5, %v805_v14 }
0x1105   :  { %v784_v17 = vmul.f32 0.5, %v783_v15 }
0x1106   :  { %v807_v18 = vsel %vm1295_vm3, %v1156_v12, %v806_v16 }
0x1107   :  { %v785_v30 = vsel %vm1295_vm3, %v1158_v13, %v784_v17  ;;  %810 = vrot.lane.b32.xlu2 %v807_v18, %s1249_s5  ;;  %v808_v42 = vmul.f32 %v807_v18, %v722_v23  ;;  %v1687_v13 = vld [vmem:[%s1721_s3 + $0x2a] ss:$0 sm:$0xff] }
0x1108   :  { %788 = vrot.lane.b32.xlu1 %v785_v30, %s1249_s5  ;;  %v786_v46 = vmul.f32 %v785_v30, %v700_v25 }
0x1161   :  { %v811_v37 = vpop.permute.xlu2 %810 }
0x1162   :  { %v813_v38 = vmul.f32 %v811_v37, %v807_v18 }
0x1164   :  { %815 = vrot.lane.b32.xlu1 %v813_v38, %s1250_s6 }
0x117a   :  { %v789_v39 = vpop.permute.xlu1 %788 }
0x117b   :  { %v791_v41 = vmul.f32 %v789_v39, %v785_v30 }
0x117d   :  { %793 = vrot.lane.b32.xlu0 %v791_v41, %s1250_s6 }
0x11d6   :  { %v816_v43 = vpop.permute.xlu1 %815 }
0x11d7   :  { %v818_v45 = vadd.f32 %v816_v43, %v808_v42 }
0x11d9   :  { %1159 = vtanh.f32 %v818_v45 }
0x11df   :  { %v1160_v22 = vpop.eup %1159 }
0x11e0   :  { %821 = vrot.lane.b32.xlu0 %v1160_v22, %s1249_s5 }
0x11ef   :  { %v794_v26 = vpop.permute.xlu0 %793 }
0x11f0   :  { %v796_v32 = vadd.f32 %v794_v26, %v786_v46 }
0x11f2   :  { %1161 = vtanh.f32 %v796_v32 }
0x11f8   :  { %v1162_v33 = vpop.eup %1161 }
0x11f9   :  { %799 = vrot.lane.b32.xlu2 %v1162_v33, %s1249_s5 }
0x1252   :  { %v822_v47 = vpop.permute.xlu0 %821 }
0x1253   :  { %v800_v34 = vpop.permute.xlu2 %799  ;;  %v824_v48 = vmul.f32 %v822_v47, %v807_v18 }
0x1254   :  { %v802_v35 = vmul.f32 %v800_v34, %v785_v30 }
0x1255   :  { %826 = vrot.lane.b32.xlu1 %v824_v48, %s1250_s6 }
0x1256   :  { %830 = vrot.lane.b32.xlu2 %v802_v35, %s1249_s5 }
0x12b0   :  { %v831_v36 = vpop.permute.xlu2 %830 }
0x12c7   :  { %v827_v49 = vpop.permute.xlu1 %826 }
0x12c8   :  { %v833_v50 = vsel %vm159_vm4, %v827_v49, %v831_v36 }
0x12c9   :  { %1081 = vmatmul.msk.f32.vlgmr.msrb.gmra.mxu0 %vm161_vm5, %v833_v50 }
0x1346   :  { %v854_v51 = vpop.f32.mrf.mxu0 }
0x1347   :  { %v857_v52 = vadd.f32 %v1432_v40, %v854_v51  ;;  %v896_v40 = vld [vmem:[%s1721_s3 + $0x20] sm:$0xff] }
0x1348   :  { %933 = vmatpush.msrb.mxu1 %v896_v40 }
0x1349   :  { %1163 = vtanh.f32 %v857_v52 }
0x134a   :  { %934 = vmatpush.msrb.mxu1 %v895_v10 }
0x134c   :  { %935 = vmatpush.msrb.mxu1 %v894_v58 }
0x134e   :  { %936 = vmatpush.msrb.mxu1 %v893_v2 }
0x134f   :  { %v1164_v53 = vpop.eup %1163 }
0x1350   :  { %v859_v54 = vadd.f32 1.0, %v1164_v53 }
0x1352   :  { %v860_v56 = vmul.f32 0.5, %v859_v54 }
0x1354   :  { %v861_v57 = vsel %vm1295_vm3, %v1164_v53, %v860_v56 }
0x1355   :  { %864 = vrot.lane.b32.xlu0 %v861_v57, %s1249_s5  ;;  %v862_v21 = vmul.f32 %v861_v57, %v796_v32 }
0x135d   :  { %905 = vrot.lane.b32.xlu0 %v889_v44, %s1250_s6 }
0x13c7   :  { %v865_v55 = vpop.permute.xlu0 %864 }
0x13c8   :  { %v867_v59 = vmul.f32 %v865_v55, %v861_v57 }
0x13ca   :  { %869 = vrot.lane.b32.xlu1 %v867_v59, %s1250_s6 }
0x13cf   :  { %v906_v19 = vpop.permute.xlu0 %905 }
0x13d0   :  { %1082 = vmatmul.msk.f32.vlgmr.msrb.gmra.mxu1 %vm159_vm4, %v906_v19 }
0x13d2   :  { %907 = vrot.lane.b32.xlu1 %v890_v20, %s1250_s6 }
0x143c   :  { %v870_v23 = vpop.permute.xlu1 %869 }
0x143d   :  { %v872_v25 = vadd.f32 %v870_v23, %v862_v21 }
0x143f   :  { %1165 = vtanh.f32 %v872_v25 }
0x1444   :  { %v908_v61 = vpop.permute.xlu1 %907 }
0x1445   :  { %v1166_v62 = vpop.eup %1165  ;;  %1083 = vmatmul.msk.f32.gmra.mxu1 %vm159_vm4, %v908_v61 }
0x1446   :  { %875 = vrot.lane.b32.xlu2 %v1166_v62, %s1249_s5 }
0x144d   :  { %v938_v31 = vpop.f32.mrf.mxu1 }
0x144e   :  { %v939_v0 = vadd.f32 %v1667_v63, %v938_v31  ;;  %909 = vrot.lane.b32.xlu2 %v891_v28, %s1250_s6 }
0x1450   :  { %1167 = vtanh.f32 %v939_v0 }
0x1456   :  { %v1168_v29 = vpop.eup %1167 }
0x1457   :  { %v955_v4 = vmul.f32 %v1168_v29, %v1676_v1 }
0x1459   :  { %v959_v5 = vsel %vm159_vm4, %v955_v4, 0.0 }
0x145a   :  { %960 = vadd.xlane.f32.xlu1 %v959_v5 }
0x14a0   :  { %v876_v6 = vpop.permute.xlu2 %875 }
0x14a1   :  { %v878_v7 = vmul.f32 %v876_v6, %v861_v57 }
0x14a3   :  { %v886_v8 = vrot.slane %v878_v7, 4 }
0x14a5   :  { %v892_v24 = vsel %vm888_vm6, %v802_v35, %v886_v8 }
0x14a6   :  { %911 = vrot.lane.b32.xlu0 %v892_v24, %s1250_s6 }
0x14a8   :  { %v910_v9 = vpop.permute.xlu2 %909 }
0x14a9   :  { %1084 = vmatmul.msk.f32.gmra.mxu1 %vm159_vm4, %v910_v9 }
0x14c2   :  { %v941_v11 = vpop.f32.mrf.mxu1 }
0x14c3   :  { %v942_v12 = vadd.f32 %v1667_v63, %v941_v11 }
0x14c5   :  { %1169 = vtanh.f32 %v942_v12 }
0x14cb   :  { %v1170_v14 = vpop.eup %1169 }
0x14cc   :  { %v956_v15 = vmul.f32 %v1170_v14, %v1676_v1 }
0x14cd   :  { %v961_v16 = vpop.xlane.xlu1 %960 }
0x14ce   :  { %v972_v17 = vadd.f32 %v1687_v13, %v961_v16  ;;  %v962_v18 = vsel %vm159_vm4, %v956_v15, 0.0 }
0x14cf   :  { %963 = vadd.xlane.f32.xlu2 %v962_v18 }
0x14d0   :  { %v1086_v30 = vmul.f32 -1.442695, %v972_v17 }
0x14d2   :  { %1171 = vpow2.f32 %v1086_v30 }
0x14d8   :  { %v1172_v37 = vpop.eup %1171 }
0x14d9   :  { %v988_v38 = vadd.f32 1.0, %v1172_v37 }
0x14db   :  { %1173 = vrcp.f32 %v988_v38  ;;  %v1003_v43 = vand.u32 2147483648, %v988_v38  ;;  %v1001_v22 = vand.u32 2147483647, %v988_v38  ;;  %vm997_vm8 = vweird.f32 %v988_v38 }
0x14dd   :  { %v1004_v26 = vor.u32 1.1754944e-38, %v1003_v43  ;;  %vm1002_vm11 = vcmp.eq.f32.partialorder %v1001_v22, 8.507059e+37 }
0x14e1   :  { %v1174_v39 = vpop.eup %1173 }
0x14e2   :  { %v993_v41 = vmul.f32 %v1174_v39, %v988_v38  ;;  %vm998_vm7 = vweird.f32 %v1174_v39 }
0x14e3   :  { %vm999_vm10 = vmor %vm997_vm8, %vm998_vm7 }
0x14e4   :  { %v994_v42 = vsub.f32 1.0, %v993_v41 }
0x14e6   :  { %v995_v45 = vmul.f32 %v1174_v39, %v994_v42 }
0x14e8   :  { %v996_v46 = vadd.f32 %v1174_v39, %v995_v45 }
0x14ea   :  { %v1000_v32 = vsel %vm999_vm10, %v1174_v39, %v996_v46 }
0x14eb   :  { %v1005_v33 = vsel %vm1002_vm11, %v1004_v26, %v1000_v32 }
0x14ec   :  { %1053 = vst.msk [vmem:[%s1722_s4] sm:$0xff] %vm1052_vm9, %v1005_v33 }
0x1518   :  { %v912_v47 = vpop.permute.xlu0 %911 }
0x1519   :  { %1085 = vmatmul.msk.f32.gmra.mxu1 %vm159_vm4, %v912_v47 }
0x1526   :  { %v944_v34 = vpop.f32.mrf.mxu1 }
0x1527   :  { %v945_v48 = vadd.f32 %v1667_v63, %v944_v34 }
0x1529   :  { %1175 = vtanh.f32 %v945_v48 }
0x152f   :  { %v1176_v35 = vpop.eup %1175 }
0x1530   :  { %v957_v36 = vmul.f32 %v1176_v35, %v1676_v1 }
0x1532   :  { %v965_v49 = vsel %vm159_vm4, %v957_v36, 0.0 }
0x1533   :  { %966 = vadd.xlane.f32.xlu0 %v965_v49 }
0x1542   :  { %v964_v50 = vpop.xlane.xlu2 %963 }
0x1543   :  { %v973_v51 = vadd.f32 %v1687_v13, %v964_v50 }
0x1545   :  { %v1087_v52 = vmul.f32 -1.442695, %v973_v51 }
0x1547   :  { %1177 = vpow2.f32 %v1087_v52 }
0x154d   :  { %v1178_v53 = vpop.eup %1177 }
0x154e   :  { %v989_v54 = vadd.f32 1.0, %v1178_v53 }
0x1550   :  { %1179 = vrcp.f32 %v989_v54  ;;  %v1018_v44 = vand.u32 2147483648, %v989_v54  ;;  %v1016_v10 = vand.u32 2147483647, %v989_v54  ;;  %vm1012_vm13 = vweird.f32 %v989_v54 }
0x1552   :  { %v1019_v2 = vor.u32 1.1754944e-38, %v1018_v44  ;;  %vm1017_vm15 = vcmp.eq.f32.partialorder %v1016_v10, 8.507059e+37 }
0x1556   :  { %v1180_v56 = vpop.eup %1179 }
0x1557   :  { %v1008_v57 = vmul.f32 %v1180_v56, %v989_v54  ;;  %vm1013_vm12 = vweird.f32 %v1180_v56 }
0x1558   :  { %vm1014_vm14 = vmor %vm1012_vm13, %vm1013_vm12 }
0x1559   :  { %v1009_v3 = vsub.f32 1.0, %v1008_v57 }
0x155b   :  { %v1010_v40 = vmul.f32 %v1180_v56, %v1009_v3 }
0x155d   :  { %v1011_v58 = vadd.f32 %v1180_v56, %v1010_v40 }
0x155f   :  { %v1015_v55 = vsel %vm1014_vm14, %v1180_v56, %v1011_v58 }
0x1560   :  { %v1020_v59 = vsel %vm1017_vm15, %v1019_v2, %v1015_v55 }
0x1561   :  { %1054 = vst.msk [vmem:[%s1722_s4 + $0x8] sm:$0xff] %vm1052_vm9, %v1020_v59 }
0x1596   :  { %v947_v60 = vpop.f32.mrf.mxu1 }
0x1597   :  { %v948_v19 = vadd.f32 %v1667_v63, %v947_v60 }
0x1599   :  { %1181 = vtanh.f32 %v948_v19 }
0x159f   :  { %v1182_v20 = vpop.eup %1181 }
0x15a0   :  { %v958_v21 = vmul.f32 %v1182_v20, %v1676_v1 }
0x15a2   :  { %v968_v23 = vsel %vm159_vm4, %v958_v21, 0.0 }
0x15a3   :  { %969 = vadd.xlane.f32.xlu2 %v968_v23 }
0x15a6   :  { %v967_v25 = vpop.xlane.xlu0 %966 }
0x15a7   :  { %v974_v61 = vadd.f32 %v1687_v13, %v967_v25 }
0x15a9   :  { %v1088_v62 = vmul.f32 -1.442695, %v974_v61 }
0x15ab   :  { %1183 = vpow2.f32 %v1088_v62 }
0x15b1   :  { %v1184_v27 = vpop.eup %1183 }
0x15b2   :  { %v990_v31 = vadd.f32 1.0, %v1184_v27 }
0x15b4   :  { %1185 = vrcp.f32 %v990_v31  ;;  %v1033_v4 = vand.u32 2147483648, %v990_v31  ;;  %v1031_v5 = vand.u32 2147483647, %v990_v31  ;;  %vm1027_vm1 = vweird.f32 %v990_v31 }
0x15b6   :  { %v1034_v1 = vor.u32 1.1754944e-38, %v1033_v4  ;;  %vm1032_vm3 = vcmp.eq.f32.partialorder %v1031_v5, 8.507059e+37 }
0x15ba   :  { %v1186_v28 = vpop.eup %1185 }
0x15bb   :  { %v1023_v0 = vmul.f32 %v1186_v28, %v990_v31  ;;  %vm1028_vm0 = vweird.f32 %v1186_v28 }
0x15bc   :  { %vm1029_vm2 = vmor %vm1027_vm1, %vm1028_vm0 }
0x15bd   :  { %v1024_v29 = vsub.f32 1.0, %v1023_v0 }
0x15bf   :  { %v1025_v63 = vmul.f32 %v1186_v28, %v1024_v29 }
0x15c1   :  { %v1026_v6 = vadd.f32 %v1186_v28, %v1025_v63 }
0x15c3   :  { %v1030_v7 = vsel %vm1029_vm2, %v1186_v28, %v1026_v6 }
0x15c4   :  { %v1035_v8 = vsel %vm1032_vm3, %v1034_v1, %v1030_v7 }
0x15c5   :  { %1055 = vst.msk [vmem:[%s1722_s4 + $0x10] sm:$0xff] %vm1052_vm9, %v1035_v8 }
0x1616   :  { %v970_v24 = vpop.xlane.xlu2 %969 }
0x1617   :  { %v975_v9 = vadd.f32 %v1687_v13, %v970_v24 }
0x1619   :  { %v1089_v11 = vmul.f32 -1.442695, %v975_v9 }
0x161b   :  { %1187 = vpow2.f32 %v1089_v11 }
0x1621   :  { %v1188_v12 = vpop.eup %1187 }
0x1622   :  { %v991_v14 = vadd.f32 1.0, %v1188_v12 }
0x1624   :  { %1189 = vrcp.f32 %v991_v14  ;;  %v1048_v18 = vand.u32 2147483648, %v991_v14  ;;  %v1046_v37 = vand.u32 2147483647, %v991_v14  ;;  %vm1042_vm5 = vweird.f32 %v991_v14 }
0x1626   :  { %v1049_v39 = vor.u32 1.1754944e-38, %v1048_v18  ;;  %vm1047_vm7 = vcmp.eq.f32.partialorder %v1046_v37, 8.507059e+37 }
0x162a   :  { %v1190_v15 = vpop.eup %1189 }
0x162b   :  { %v1038_v16 = vmul.f32 %v1190_v15, %v991_v14  ;;  %vm1043_vm4 = vweird.f32 %v1190_v15 }
0x162c   :  { %vm1044_vm6 = vmor %vm1042_vm5, %vm1043_vm4 }
0x162d   :  { %v1039_v17 = vsub.f32 1.0, %v1038_v16 }
0x162f   :  { %v1040_v30 = vmul.f32 %v1190_v15, %v1039_v17 }
0x1631   :  { %v1041_v38 = vadd.f32 %v1190_v15, %v1040_v30 }
0x1633   :  { %v1045_v41 = vsel %vm1044_vm6, %v1190_v15, %v1041_v38 }
0x1634   :  { %v1050_v42 = vsel %vm1047_vm7, %v1049_v39, %v1045_v41 }
0x1635   :  { %1056 = vst.msk [vmem:[%s1722_s4 + $0x18] sm:$0xff] %vm1052_vm9, %v1050_v42 }
0x1636   :  { %1061 = vsyncpa [#allocation3], 1 }
0x1637   :  { %1062 = vsyncpa [#allocation5], 1 }

</bundles_post_ra>
